<compile_context>
chip_gen: v6e
topology: v6e:2x2x1
jax: 0.10.0
libtpu: 0.0.40
codegen_flags: <defaults>
</compile_context>

<pallas_src>
import functools

import jax
import jax.numpy as jnp
from jax import lax
from jax.experimental import pallas as pl
from jax.experimental.pallas import tpu as pltpu

# Row tile of the fused kernels.  256 is a good cross-generation compromise
# (v6e could go to 512, v7x prefers ~256 with 64 MiB VMEM, v5e 128-256).
TM = 256
LEAKY_SLOPE = 0.1   # TODO(synk): verify get_activation('leaky') slope (0.1 vs 0.01)
BN_EPS = 1e-5
SPP_POOL_SIZES = (5, 9, 13)


def _round_up(x, m):
    return ((x + m - 1) // m) * m


def _apply_act(acc, act):
    if act == "leaky":
        return jnp.where(acc >= 0.0, acc, LEAKY_SLOPE * acc)
    if act == "relu":
        return jnp.maximum(acc, 0.0)
    return acc


# --------------------------------------------------------------------------
# Pallas kernel 1: fused matmul  out = act(x @ w + b)   (1x1 convs, s2 patches)
# --------------------------------------------------------------------------
def _mm_kernel_factory(act):
    def kernel(x_ref, w_ref, b_ref, o_ref):
        acc = jnp.dot(x_ref[...].astype(jnp.bfloat16), w_ref[...],
                      preferred_element_type=jnp.float32)
        acc = acc + b_ref[...]
        o_ref[...] = _apply_act(acc, act)
    return kernel


def matmul_bias_act(x2d, w, b, act):
    """x2d (M, K) f32, w (K, N) bf16, b (N,) f32 -> (M, N) f32 = act(x @ w + b)."""
    M, K = x2d.shape
    N = w.shape[1]
    tm = min(TM, _round_up(M, 8))
    return pl.pallas_call(
        _mm_kernel_factory(act),
        out_shape=jax.ShapeDtypeStruct((M, N), jnp.float32),
        grid=(pl.cdiv(M, tm),),
        in_specs=[
            pl.BlockSpec((tm, K), lambda i: (i, 0)),
            pl.BlockSpec((K, N), lambda i: (0, 0)),
            pl.BlockSpec((1, N), lambda i: (0, 0)),
        ],
        out_specs=pl.BlockSpec((tm, N), lambda i: (i, 0)),
        compiler_params=pltpu.CompilerParams(dimension_semantics=("parallel",)),
    )(x2d, w, b.reshape(1, N))


# --------------------------------------------------------------------------
# Pallas kernel 2: fused 3x3 stride-1 SAME conv (+folded BN bias) + activation
# --------------------------------------------------------------------------
def _conv3x3_kernel_factory(act, tm, wp, cout):
    offs = [ki * wp + kj for ki in range(3) for kj in range(3)]

    def kernel(x_ref, w_ref, b_ref, o_ref):
        # x_ref: (lin, Cin) flattened padded image (whole image in VMEM)
        # w_ref: (9, Cin, Cout) bf16, scale folded
        # b_ref: (1, Cout) f32
        # o_ref: (tm, Cout) tile of the "wide" (Ho * Wp)-row flat output
        row0 = pl.multiple_of(pl.program_id(1) * tm, 8)
        acc = jnp.zeros((tm, cout), jnp.float32)
        for idx, off in enumerate(offs):
            xs = x_ref[pl.ds(row0 + off, tm), :].astype(jnp.bfloat16)
            acc = acc + jnp.dot(xs, w_ref[idx], preferred_element_type=jnp.float32)
        acc = acc + b_ref[...]
        o_ref[...] = _apply_act(acc, act)

    return kernel


def conv3x3_s1_fwd(p, x, act):
    """Fused 3x3 stride-1 SAME conv, NHWC.  Patch gather happens in VMEM."""
    N, H, W, Cin = x.shape
    Cout = p["w"].shape[-1]
    Hp, Wp = H + 2, W + 2
    m_out = H * Wp                            # "wide" output rows per image
    tm = min(TM, _round_up(m_out, 8))
    nt = pl.cdiv(m_out, tm)
    need = nt * tm + 2 * Wp + 2               # max flat input row touched + 1
    extra_h = max(0, -(-(need - Hp * Wp) // Wp))
    xp = jnp.pad(x, ((0, 0), (1, 1 + extra_h), (1, 1), (0, 0)))
    lin = (Hp + extra_h) * Wp
    xf = xp.reshape(N, lin, Cin)              # free collapse
    w = p["w"].reshape(9, Cin, Cout)          # bf16, BN scale already folded
    b = p["b"].reshape(1, Cout)

    out_flat = pl.pallas_call(
        _conv3x3_kernel_factory(act, tm, Wp, Cout),
        out_shape=jax.ShapeDtypeStruct((N, m_out, Cout), jnp.float32),
        grid=(N, nt),
        in_specs=[
            pl.BlockSpec((None, lin, Cin), lambda n, t: (n, 0, 0)),
            pl.BlockSpec((9, Cin, Cout), lambda n, t: (0, 0, 0)),
            pl.BlockSpec((1, Cout), lambda n, t: (0, 0)),
        ],
        out_specs=pl.BlockSpec((None, tm, Cout), lambda n, t: (n, t, 0)),
        compiler_params=pltpu.CompilerParams(
            dimension_semantics=("parallel", "parallel")),
    )(xf, w, b)
    # drop the 2 wrap-around columns of the wide layout
    return out_flat.reshape(N, H, Wp, Cout)[:, :, :W, :]


# --------------------------------------------------------------------------
# Conv dispatch + remaining glue (NHWC)
# --------------------------------------------------------------------------
def conv1x1_fwd(p, x, act):
    N, H, W, Cin = x.shape
    Cout = p["w"].shape[-1]
    out = matmul_bias_act(x.reshape(N * H * W, Cin),
                          p["w"].reshape(Cin, Cout), p["b"], act)
    return out.reshape(N, H, W, Cout)


def conv3x3_s2_fwd(p, x, act):
    # Only the two tiny PAN downsample routes; patches built in glue (2.25x
    # the input, negligible at 16x16 / 8x8 maps).
    N, H, W, Cin = x.shape
    Cout = p["w"].shape[-1]
    xp = jnp.pad(x, ((0, 0), (1, 1), (1, 1), (0, 0)))
    Ho = (H + 2 - 3) // 2 + 1
    Wo = (W + 2 - 3) // 2 + 1
    cols = [xp[:, ki:ki + 2 * Ho:2, kj:kj + 2 * Wo:2, :]
            for ki in range(3) for kj in range(3)]
    patches = jnp.concatenate(cols, axis=-1).reshape(N * Ho * Wo, 9 * Cin)
    out = matmul_bias_act(patches, p["w"].reshape(9 * Cin, Cout), p["b"], act)
    return out.reshape(N, Ho, Wo, Cout)


def conv_fwd(p, x, act, stride=1):
    k = p["w"].shape[0]
    if k == 1:
        return conv1x1_fwd(p, x, act)
    if stride == 1:
        return conv3x3_s1_fwd(p, x, act)
    return conv3x3_s2_fwd(p, x, act)


def upsample_nearest2x(x):           # F.interpolate(scale_factor=2) default nearest
    return jnp.repeat(jnp.repeat(x, 2, axis=1), 2, axis=2)


def upsample_bilinear2x(x):          # nn.Upsample(2, 'bilinear', align_corners=False)
    N, H, W, C = x.shape
    return jax.image.resize(x, (N, 2 * H, 2 * W, C), method="bilinear")


def maxpool_same(x, size):           # MaxPool2d(k=size, stride=1, pad=size//2)
    pad = size // 2
    return lax.reduce_window(
        x, -jnp.inf, lax.max,
        (1, size, size, 1), (1, 1, 1, 1),
        [(0, 0), (pad, pad), (pad, pad), (0, 0)])


# --------------------------------------------------------------------------
# Deterministic parameter construction (arrays-only pytrees, jit friendly)
# --------------------------------------------------------------------------
class KeyGen:
    def __init__(self, seed):
        self.key = jax.random.PRNGKey(seed)

    def __call__(self):
        self.key, sub = jax.random.split(self.key)
        return sub


def _fold_conv(w, scale, bias):
    """Fold the per-channel scale into the weight; store the weight in bf16."""
    w = w * scale.reshape(1, 1, 1, -1)
    return {"w": w.astype(jnp.bfloat16), "b": bias.astype(jnp.float32)}


def make_convbn(kg, cin, cout, k):
    """ConvBNLayer: conv(bias=False) + BN folded into weight scale / bias."""
    w = 0.05 * jax.random.normal(kg(), (k, k, cin, cout), jnp.float32)
    gamma = 1.0 + 0.1 * jax.random.normal(kg(), (cout,), jnp.float32)
    beta = 0.1 * jax.random.normal(kg(), (cout,), jnp.float32)
    mean = 0.1 * jax.random.normal(kg(), (cout,), jnp.float32)
    var = 1.0 + 0.1 * jax.random.uniform(kg(), (cout,), jnp.float32)
    scale = gamma / jnp.sqrt(var + BN_EPS)
    bias = beta - mean * scale
    return _fold_conv(w, scale, bias)


def make_convmodule(kg, cin, cout, k):
    """mmcv ConvModule with norm_cfg=None: conv(bias=True) + ReLU."""
    w = 0.05 * jax.random.normal(kg(), (k, k, cin, cout), jnp.float32)
    b = 0.1 * jax.random.normal(kg(), (cout,), jnp.float32)
    return _fold_conv(w, jnp.ones((cout,), jnp.float32), b)


def _fuse_siblings(p1, p2):
    """Two convs sharing the same input -> one lane-denser matmul."""
    return {"w": jnp.concatenate([p1["w"], p2["w"]], axis=-1),
            "b": jnp.concatenate([p1["b"], p2["b"]], axis=-1)}


def make_csp_stage(kg, cin, cout, n, spp=False):
    cm = cout // 2
    conv1 = make_convbn(kg, cin, cm, 1)
    conv2 = make_convbn(kg, cin, cm, 1)
    p = {"conv12": _fuse_siblings(conv1, conv2), "blocks": []}
    for i in range(n):
        p["blocks"].append({"conv1": make_convbn(kg, cm, cm, 3),
                            "conv2": make_convbn(kg, cm, cm, 3)})
        if i == (n - 1) // 2 and spp:
            p["blocks"].append({"spp_conv": make_convbn(kg, cm * 4, cm, 1)})
    p["conv3"] = make_convbn(kg, 2 * cm, cout, 1)
    return p


def make_custom_csp_pan(kg, in_channels, out_channels, stage_num, block_num, spp):
    nb = len(in_channels)
    in_rev = in_channels[::-1]
    fpn_stages, fpn_routes = [], []
    ch_pre = None
    for i, (ci, co) in enumerate(zip(in_rev, out_channels)):
        if i > 0:
            ci = ci + ch_pre // 2
        stage = [make_csp_stage(kg, ci if j == 0 else co, co, block_num,
                                spp=(spp and i == 0)) for j in range(stage_num)]
        fpn_stages.append(stage)
        if i < nb - 1:
            fpn_routes.append(make_convbn(kg, co, co // 2, 1))
        ch_pre = co
    pan_stages, pan_routes = [], []
    for i in reversed(range(nb - 1)):
        pan_routes.append(make_convbn(kg, out_channels[i + 1], out_channels[i + 1], 3))
        ci = out_channels[i] + out_channels[i + 1]
        stage = [make_csp_stage(kg, ci if j == 0 else out_channels[i],
                                out_channels[i], block_num, spp=False)
                 for j in range(stage_num)]
        pan_stages.append(stage)
    return {"fpn_stages": fpn_stages, "fpn_routes": fpn_routes,
            "pan_stages": pan_stages[::-1], "pan_routes": pan_routes[::-1]}


def make_mask_feat_head(kg, in_channels, feat_channels, start_level, end_level,
                        out_channels):
    convs_all = []
    for i in range(start_level, end_level + 1):
        level = []
        if i == 0:
            level.append(make_convmodule(kg, in_channels[i], feat_channels, 3))
        else:
            for j in range(i):
                if j == 0:
                    chn = in_channels[i] + 2 if i == end_level else in_channels[i]
                    level.append(make_convmodule(kg, chn, feat_channels, 3))
                else:
                    level.append(make_convmodule(kg, feat_channels, feat_channels, 3))
        convs_all.append(level)
    return {"convs": convs_all,
            "pred": make_convmodule(kg, feat_channels, out_channels, 1)}


# --------------------------------------------------------------------------
# Forward passes (NHWC)
# --------------------------------------------------------------------------
def csp_stage_fwd(p, x, act):
    y12 = conv_fwd(p["conv12"], x, act)       # fused conv1 + conv2 (single matmul)
    cm = y12.shape[-1] // 2
    y1, y2 = y12[..., :cm], y12[..., cm:]
    for blk in p["blocks"]:
        if "conv1" in blk:                    # BasicBlock, shortcut=False
            y2 = conv_fwd(blk["conv1"], y2, act)
            y2 = conv_fwd(blk["conv2"], y2, act)
        else:                                 # SPP
            outs = [y2] + [maxpool_same(y2, s) for s in SPP_POOL_SIZES]
            y2 = conv_fwd(blk["spp_conv"], jnp.concatenate(outs, axis=-1), act)
    return conv_fwd(p["conv3"], jnp.concatenate([y1, y2], axis=-1), act)


def custom_csp_pan_fwd(p, blocks, act):
    nb = len(p["fpn_stages"])
    blocks = blocks[::-1]                     # deepest first
    fpn_feats = []
    route = None
    for i, blk in enumerate(blocks):
        if i > 0:
            blk = jnp.concatenate([route, blk], axis=-1)
        x = blk
        for st in p["fpn_stages"][i]:
            x = csp_stage_fwd(st, x, act)
        route = x
        fpn_feats.append(route)
        if i < nb - 1:
            route = conv_fwd(p["fpn_routes"][i], route, act)
            # TODO(synk): fold the nearest-2x upsample into the consumer's 1x1
            #             conv gather instead of materializing a 4x tensor.
            route = upsample_nearest2x(route)
    pan_feats = [fpn_feats[-1]]
    route = fpn_feats[-1]
    for i in reversed(range(nb - 1)):
        blk = fpn_feats[i]
        route = conv_fwd(p["pan_routes"][i], route, act, stride=2)   # 3x3 s2
        x = jnp.concatenate([route, blk], axis=-1)
        for st in p["pan_stages"][i]:
            x = csp_stage_fwd(st, x, act)
        route = x
        pan_feats.append(route)
    return pan_feats[::-1]


def _coord_feat(n, h, w):
    xr = jnp.linspace(-1.0, 1.0, w, dtype=jnp.float32)
    yr = jnp.linspace(-1.0, 1.0, h, dtype=jnp.float32)
    yy, xx = jnp.meshgrid(yr, xr, indexing="ij")
    coord = jnp.stack([xx, yy], axis=-1)[None]       # channel order [x, y]
    return jnp.broadcast_to(coord, (n, h, w, 2))


def mask_feat_fwd(p, feats, start_level):
    n_levels = len(p["convs"])
    inputs = feats[start_level:start_level + n_levels]
    out = conv_fwd(p["convs"][0][0], inputs[0], "relu")
    for i in range(1, n_levels):
        x = inputs[i]
        if i == n_levels - 1:
            N, H, W, _ = x.shape
            x = jnp.concatenate([x, _coord_feat(N, H, W)], axis=-1)
        for conv in p["convs"][i]:
            x = conv_fwd(conv, x, "relu")
            x = upsample_bilinear2x(x)
        out = out + x
    return conv_fwd(p["pred"], out, "relu")


@functools.partial(jax.jit, static_argnames=("act", "mask_start_level"))
def custom_csp_pan_seg_fwd(params, blocks_nchw, act="leaky", mask_start_level=0):
    blocks = [jnp.transpose(b, (0, 2, 3, 1)) for b in blocks_nchw]   # -> NHWC
    pan_feats = custom_csp_pan_fwd(params["pan"], blocks[1:], act)
    mask_feat = mask_feat_fwd(params["mask"], blocks, mask_start_level)
    pan_feats = [jnp.transpose(f, (0, 3, 1, 2)) for f in pan_feats]  # -> NCHW
    mask_feat = jnp.transpose(mask_feat, (0, 3, 1, 2))
    return mask_feat, pan_feats


# --------------------------------------------------------------------------
# Main
# --------------------------------------------------------------------------
if __name__ == "__main__":
    pan_in_channels = [8, 16, 32]        # P3, P4, P5 (shallow -> deep)
    pan_out_channels = [32, 16, 8]       # deepest -> shallowest (PyTorch convention)
    mask_in_channels = [4, 8, 16, 32]    # P2, P3, P4, P5
    feat_channels, mask_out_channels = 8, 8

    kg = KeyGen(42)
    params = {
        "pan": make_custom_csp_pan(kg, pan_in_channels, pan_out_channels,
                                   stage_num=1, block_num=1, spp=False),
        "mask": make_mask_feat_head(kg, mask_in_channels, feat_channels,
                                    start_level=0, end_level=3,
                                    out_channels=mask_out_channels),
    }

    # Quick numerical self-check of the fused 3x3 kernel vs XLA conv
    # (odd spatial sizes exercise the masked partial tiles).
    xc = jax.random.normal(kg(), (2, 9, 11, 6), jnp.float32)
    pc = make_convbn(kg, 6, 8, 3)
    got = conv3x3_s1_fwd(pc, xc, "leaky")
    ref = lax.conv_general_dilated(
        xc.astype(jnp.bfloat16).astype(jnp.float32),
        pc["w"].astype(jnp.float32), (1, 1), "SAME",
        dimension_numbers=("NHWC", "HWIO", "NHWC"),
        precision=lax.Precision.HIGHEST)
    ref = ref + pc["b"].reshape(1, 1, 1, -1)
    ref = jnp.where(ref >= 0, ref, LEAKY_SLOPE * ref)
    assert bool(jnp.allclose(got, ref, atol=2e-2, rtol=2e-2)), \
        float(jnp.max(jnp.abs(got - ref)))

    key = jax.random.PRNGKey(0)
    k1, k2, k3, k4 = jax.random.split(key, 4)
    B = 2
    blocks_nchw = [
        jax.random.normal(k1, (B, 4, 32, 32), jnp.float32),   # P2
        jax.random.normal(k2, (B, 8, 16, 16), jnp.float32),   # P3
        jax.random.normal(k3, (B, 16, 8, 8), jnp.float32),    # P4
        jax.random.normal(k4, (B, 32, 4, 4), jnp.float32),    # P5
    ]

    mask_feat, pan_feats = custom_csp_pan_seg_fwd(params, blocks_nchw, act="leaky")
    jax.block_until_ready(mask_feat)
    for f in pan_feats:
        jax.block_until_ready(f)

    assert mask_feat.shape == (B, mask_out_channels, 32, 32)
    assert pan_feats[0].shape == (B, 32, 4, 4)
    assert pan_feats[1].shape == (B, 16, 8, 8)
    assert pan_feats[2].shape == (B, 8, 16, 16)
    assert bool(jnp.all(jnp.isfinite(mask_feat)))
    print("KERNEL_OK")
</pallas_src>

<mosaic_0001>
module attributes {stable_mosaic.version = 11 : i64} {
  func.func @kernel(%arg0: i32, %arg1: i32, %arg2: memref<1x156x6xf32, #tpu.memory_space<vmem>>, %arg3: memref<9x6x8xbf16, #tpu.memory_space<vmem>>, %arg4: memref<1x8xf32, #tpu.memory_space<vmem>>, %arg5: memref<1x120x8xf32, #tpu.memory_space<vmem>>) attributes {dimension_semantics = [#tpu.dimension_semantics<parallel>, #tpu.dimension_semantics<parallel>], iteration_bounds = array<i64: 2, 1>, scalar_prefetch = 0 : i64, scratch_operands = 0 : i64, tpu.core_type = #tpu.core_type<tc>, window_params = [{transform_indices = @transform_0, window_bounds = array<i64: 1, 156, 6>}, {pipeline_mode = #tpu.pipeline_mode<synchronous>, transform_indices = @transform_1, window_bounds = array<i64: 9, 6, 8>}, {pipeline_mode = #tpu.pipeline_mode<synchronous>, transform_indices = @transform_2, window_bounds = array<i64: 1, 8>}, {transform_indices = @transform_3, window_bounds = array<i64: 1, 120, 8>}]} {
    %c120_i32 = arith.constant 120 : i32
    %0 = arith.muli %arg1, %c120_i32 : i32
    %1 = tpu.assume_multiple %0, 8 : i32
    %cst = arith.constant 0.000000e+00 : f32
    %2 = vector.broadcast %cst : f32 to vector<120x8xf32>
    %c0_i32 = arith.constant 0 : i32
    %3 = arith.addi %1, %c0_i32 : i32
    %c0 = arith.constant 0 : index
    %4 = arith.index_cast %3 : i32 to index
    %c0_0 = arith.constant 0 : index
    %5 = vector.load %arg2[%c0, %4, %c0_0] : memref<1x156x6xf32, #tpu.memory_space<vmem>>, vector<1x120x6xf32>
    %6 = vector.shape_cast %5 : vector<1x120x6xf32> to vector<120x6xf32>
    %7 = arith.truncf %6 : vector<120x6xf32> to vector<120x6xbf16>
    %c0_1 = arith.constant 0 : index
    %c0_2 = arith.constant 0 : index
    %c0_3 = arith.constant 0 : index
    %8 = vector.load %arg3[%c0_1, %c0_2, %c0_3] : memref<9x6x8xbf16, #tpu.memory_space<vmem>>, vector<1x6x8xbf16>
    %9 = vector.shape_cast %8 : vector<1x6x8xbf16> to vector<6x8xbf16>
    %cst_4 = arith.constant dense<0.000000e+00> : vector<120x8xf32>
    %10 = tpu.matmul %7, %9, %cst_4 {dimension_numbers = #tpu.dot_dimension_numbers<[1], [0], [0], [1], [0, 0, 1, 1], [], []>} : vector<120x6xbf16>, vector<6x8xbf16>, vector<120x8xf32> -> vector<120x8xf32>
    %11 = arith.addf %2, %10 : vector<120x8xf32>
    %c1_i32 = arith.constant 1 : i32
    %12 = arith.addi %1, %c1_i32 : i32
    %c0_5 = arith.constant 0 : index
    %13 = arith.index_cast %12 : i32 to index
    %c0_6 = arith.constant 0 : index
    %14 = vector.load %arg2[%c0_5, %13, %c0_6] : memref<1x156x6xf32, #tpu.memory_space<vmem>>, vector<1x120x6xf32>
    %15 = vector.shape_cast %14 : vector<1x120x6xf32> to vector<120x6xf32>
    %16 = arith.truncf %15 : vector<120x6xf32> to vector<120x6xbf16>
    %c1 = arith.constant 1 : index
    %c0_7 = arith.constant 0 : index
    %c0_8 = arith.constant 0 : index
    %17 = vector.load %arg3[%c1, %c0_7, %c0_8] : memref<9x6x8xbf16, #tpu.memory_space<vmem>>, vector<1x6x8xbf16>
    %18 = vector.shape_cast %17 : vector<1x6x8xbf16> to vector<6x8xbf16>
    %cst_9 = arith.constant dense<0.000000e+00> : vector<120x8xf32>
    %19 = tpu.matmul %16, %18, %cst_9 {dimension_numbers = #tpu.dot_dimension_numbers<[1], [0], [0], [1], [0, 0, 1, 1], [], []>} : vector<120x6xbf16>, vector<6x8xbf16>, vector<120x8xf32> -> vector<120x8xf32>
    %20 = arith.addf %11, %19 : vector<120x8xf32>
    %c2_i32 = arith.constant 2 : i32
    %21 = arith.addi %1, %c2_i32 : i32
    %c0_10 = arith.constant 0 : index
    %22 = arith.index_cast %21 : i32 to index
    %c0_11 = arith.constant 0 : index
    %23 = vector.load %arg2[%c0_10, %22, %c0_11] : memref<1x156x6xf32, #tpu.memory_space<vmem>>, vector<1x120x6xf32>
    %24 = vector.shape_cast %23 : vector<1x120x6xf32> to vector<120x6xf32>
    %25 = arith.truncf %24 : vector<120x6xf32> to vector<120x6xbf16>
    %c2 = arith.constant 2 : index
    %c0_12 = arith.constant 0 : index
    %c0_13 = arith.constant 0 : index
    %26 = vector.load %arg3[%c2, %c0_12, %c0_13] : memref<9x6x8xbf16, #tpu.memory_space<vmem>>, vector<1x6x8xbf16>
    %27 = vector.shape_cast %26 : vector<1x6x8xbf16> to vector<6x8xbf16>
    %cst_14 = arith.constant dense<0.000000e+00> : vector<120x8xf32>
    %28 = tpu.matmul %25, %27, %cst_14 {dimension_numbers = #tpu.dot_dimension_numbers<[1], [0], [0], [1], [0, 0, 1, 1], [], []>} : vector<120x6xbf16>, vector<6x8xbf16>, vector<120x8xf32> -> vector<120x8xf32>
    %29 = arith.addf %20, %28 : vector<120x8xf32>
    %c13_i32 = arith.constant 13 : i32
    %30 = arith.addi %1, %c13_i32 : i32
    %c0_15 = arith.constant 0 : index
    %31 = arith.index_cast %30 : i32 to index
    %c0_16 = arith.constant 0 : index
    %32 = vector.load %arg2[%c0_15, %31, %c0_16] : memref<1x156x6xf32, #tpu.memory_space<vmem>>, vector<1x120x6xf32>
    %33 = vector.shape_cast %32 : vector<1x120x6xf32> to vector<120x6xf32>
    %34 = arith.truncf %33 : vector<120x6xf32> to vector<120x6xbf16>
    %c3 = arith.constant 3 : index
    %c0_17 = arith.constant 0 : index
    %c0_18 = arith.constant 0 : index
    %35 = vector.load %arg3[%c3, %c0_17, %c0_18] : memref<9x6x8xbf16, #tpu.memory_space<vmem>>, vector<1x6x8xbf16>
    %36 = vector.shape_cast %35 : vector<1x6x8xbf16> to vector<6x8xbf16>
    %cst_19 = arith.constant dense<0.000000e+00> : vector<120x8xf32>
    %37 = tpu.matmul %34, %36, %cst_19 {dimension_numbers = #tpu.dot_dimension_numbers<[1], [0], [0], [1], [0, 0, 1, 1], [], []>} : vector<120x6xbf16>, vector<6x8xbf16>, vector<120x8xf32> -> vector<120x8xf32>
    %38 = arith.addf %29, %37 : vector<120x8xf32>
    %c14_i32 = arith.constant 14 : i32
    %39 = arith.addi %1, %c14_i32 : i32
    %c0_20 = arith.constant 0 : index
    %40 = arith.index_cast %39 : i32 to index
    %c0_21 = arith.constant 0 : index
    %41 = vector.load %arg2[%c0_20, %40, %c0_21] : memref<1x156x6xf32, #tpu.memory_space<vmem>>, vector<1x120x6xf32>
    %42 = vector.shape_cast %41 : vector<1x120x6xf32> to vector<120x6xf32>
    %43 = arith.truncf %42 : vector<120x6xf32> to vector<120x6xbf16>
    %c4 = arith.constant 4 : index
    %c0_22 = arith.constant 0 : index
    %c0_23 = arith.constant 0 : index
    %44 = vector.load %arg3[%c4, %c0_22, %c0_23] : memref<9x6x8xbf16, #tpu.memory_space<vmem>>, vector<1x6x8xbf16>
    %45 = vector.shape_cast %44 : vector<1x6x8xbf16> to vector<6x8xbf16>
    %cst_24 = arith.constant dense<0.000000e+00> : vector<120x8xf32>
    %46 = tpu.matmul %43, %45, %cst_24 {dimension_numbers = #tpu.dot_dimension_numbers<[1], [0], [0], [1], [0, 0, 1, 1], [], []>} : vector<120x6xbf16>, vector<6x8xbf16>, vector<120x8xf32> -> vector<120x8xf32>
    %47 = arith.addf %38, %46 : vector<120x8xf32>
    %c15_i32 = arith.constant 15 : i32
    %48 = arith.addi %1, %c15_i32 : i32
    %c0_25 = arith.constant 0 : index
    %49 = arith.index_cast %48 : i32 to index
    %c0_26 = arith.constant 0 : index
    %50 = vector.load %arg2[%c0_25, %49, %c0_26] : memref<1x156x6xf32, #tpu.memory_space<vmem>>, vector<1x120x6xf32>
    %51 = vector.shape_cast %50 : vector<1x120x6xf32> to vector<120x6xf32>
    %52 = arith.truncf %51 : vector<120x6xf32> to vector<120x6xbf16>
    %c5 = arith.constant 5 : index
    %c0_27 = arith.constant 0 : index
    %c0_28 = arith.constant 0 : index
    %53 = vector.load %arg3[%c5, %c0_27, %c0_28] : memref<9x6x8xbf16, #tpu.memory_space<vmem>>, vector<1x6x8xbf16>
    %54 = vector.shape_cast %53 : vector<1x6x8xbf16> to vector<6x8xbf16>
    %cst_29 = arith.constant dense<0.000000e+00> : vector<120x8xf32>
    %55 = tpu.matmul %52, %54, %cst_29 {dimension_numbers = #tpu.dot_dimension_numbers<[1], [0], [0], [1], [0, 0, 1, 1], [], []>} : vector<120x6xbf16>, vector<6x8xbf16>, vector<120x8xf32> -> vector<120x8xf32>
    %56 = arith.addf %47, %55 : vector<120x8xf32>
    %c26_i32 = arith.constant 26 : i32
    %57 = arith.addi %1, %c26_i32 : i32
    %c0_30 = arith.constant 0 : index
    %58 = arith.index_cast %57 : i32 to index
    %c0_31 = arith.constant 0 : index
    %59 = vector.load %arg2[%c0_30, %58, %c0_31] : memref<1x156x6xf32, #tpu.memory_space<vmem>>, vector<1x120x6xf32>
    %60 = vector.shape_cast %59 : vector<1x120x6xf32> to vector<120x6xf32>
    %61 = arith.truncf %60 : vector<120x6xf32> to vector<120x6xbf16>
    %c6 = arith.constant 6 : index
    %c0_32 = arith.constant 0 : index
    %c0_33 = arith.constant 0 : index
    %62 = vector.load %arg3[%c6, %c0_32, %c0_33] : memref<9x6x8xbf16, #tpu.memory_space<vmem>>, vector<1x6x8xbf16>
    %63 = vector.shape_cast %62 : vector<1x6x8xbf16> to vector<6x8xbf16>
    %cst_34 = arith.constant dense<0.000000e+00> : vector<120x8xf32>
    %64 = tpu.matmul %61, %63, %cst_34 {dimension_numbers = #tpu.dot_dimension_numbers<[1], [0], [0], [1], [0, 0, 1, 1], [], []>} : vector<120x6xbf16>, vector<6x8xbf16>, vector<120x8xf32> -> vector<120x8xf32>
    %65 = arith.addf %56, %64 : vector<120x8xf32>
    %c27_i32 = arith.constant 27 : i32
    %66 = arith.addi %1, %c27_i32 : i32
    %c0_35 = arith.constant 0 : index
    %67 = arith.index_cast %66 : i32 to index
    %c0_36 = arith.constant 0 : index
    %68 = vector.load %arg2[%c0_35, %67, %c0_36] : memref<1x156x6xf32, #tpu.memory_space<vmem>>, vector<1x120x6xf32>
    %69 = vector.shape_cast %68 : vector<1x120x6xf32> to vector<120x6xf32>
    %70 = arith.truncf %69 : vector<120x6xf32> to vector<120x6xbf16>
    %c7 = arith.constant 7 : index
    %c0_37 = arith.constant 0 : index
    %c0_38 = arith.constant 0 : index
    %71 = vector.load %arg3[%c7, %c0_37, %c0_38] : memref<9x6x8xbf16, #tpu.memory_space<vmem>>, vector<1x6x8xbf16>
    %72 = vector.shape_cast %71 : vector<1x6x8xbf16> to vector<6x8xbf16>
    %cst_39 = arith.constant dense<0.000000e+00> : vector<120x8xf32>
    %73 = tpu.matmul %70, %72, %cst_39 {dimension_numbers = #tpu.dot_dimension_numbers<[1], [0], [0], [1], [0, 0, 1, 1], [], []>} : vector<120x6xbf16>, vector<6x8xbf16>, vector<120x8xf32> -> vector<120x8xf32>
    %74 = arith.addf %65, %73 : vector<120x8xf32>
    %c28_i32 = arith.constant 28 : i32
    %75 = arith.addi %1, %c28_i32 : i32
    %c0_40 = arith.constant 0 : index
    %76 = arith.index_cast %75 : i32 to index
    %c0_41 = arith.constant 0 : index
    %77 = vector.load %arg2[%c0_40, %76, %c0_41] : memref<1x156x6xf32, #tpu.memory_space<vmem>>, vector<1x120x6xf32>
    %78 = vector.shape_cast %77 : vector<1x120x6xf32> to vector<120x6xf32>
    %79 = arith.truncf %78 : vector<120x6xf32> to vector<120x6xbf16>
    %c8 = arith.constant 8 : index
    %c0_42 = arith.constant 0 : index
    %c0_43 = arith.constant 0 : index
    %80 = vector.load %arg3[%c8, %c0_42, %c0_43] : memref<9x6x8xbf16, #tpu.memory_space<vmem>>, vector<1x6x8xbf16>
    %81 = vector.shape_cast %80 : vector<1x6x8xbf16> to vector<6x8xbf16>
    %cst_44 = arith.constant dense<0.000000e+00> : vector<120x8xf32>
    %82 = tpu.matmul %79, %81, %cst_44 {dimension_numbers = #tpu.dot_dimension_numbers<[1], [0], [0], [1], [0, 0, 1, 1], [], []>} : vector<120x6xbf16>, vector<6x8xbf16>, vector<120x8xf32> -> vector<120x8xf32>
    %83 = arith.addf %74, %82 : vector<120x8xf32>
    %c0_45 = arith.constant 0 : index
    %c0_46 = arith.constant 0 : index
    %84 = vector.load %arg4[%c0_45, %c0_46] : memref<1x8xf32, #tpu.memory_space<vmem>>, vector<1x8xf32>
    %85 = vector.broadcast %84 : vector<1x8xf32> to vector<120x8xf32>
    %86 = arith.addf %83, %85 : vector<120x8xf32>
    %cst_47 = arith.constant 0.000000e+00 : f32
    %87 = vector.broadcast %cst_47 : f32 to vector<120x8xf32>
    %88 = arith.cmpf oge, %86, %87 : vector<120x8xf32>
    %cst_48 = arith.constant 1.000000e-01 : f32
    %89 = vector.broadcast %cst_48 : f32 to vector<120x8xf32>
    %90 = arith.mulf %89, %86 : vector<120x8xf32>
    %91 = arith.select %88, %86, %90 : vector<120x8xi1>, vector<120x8xf32>
    %c0_49 = arith.constant 0 : index
    %c0_50 = arith.constant 0 : index
    %c0_51 = arith.constant 0 : index
    %92 = vector.load %arg5[%c0_49, %c0_50, %c0_51] : memref<1x120x8xf32, #tpu.memory_space<vmem>>, vector<1x120x8xf32>
    %93 = vector.shape_cast %92 : vector<1x120x8xf32> to vector<120x8xf32>
    %94 = vector.shape_cast %91 : vector<120x8xf32> to vector<1x120x8xf32>
    tpu.vector_store %arg5[%c0_49, %c0_50, %c0_51], %94 {strides = array<i32>} : memref<1x120x8xf32, #tpu.memory_space<vmem>>, vector<1x120x8xf32>,
    return
  }
  func.func @transform_0(%arg0: i32, %arg1: i32) -> (i32, i32, i32) {
    %c0_i32 = arith.constant 0 : i32
    %c0_i32_0 = arith.constant 0 : i32
    %c0_i32_1 = arith.constant 0 : i32
    return %arg0, %c0_i32, %c0_i32_0 : i32, i32, i32
  }
  func.func @transform_1(%arg0: i32, %arg1: i32) -> (i32, i32, i32) {
    %c0_i32 = arith.constant 0 : i32
    %c0_i32_0 = arith.constant 0 : i32
    %c0_i32_1 = arith.constant 0 : i32
    %c0_i32_2 = arith.constant 0 : i32
    return %c0_i32, %c0_i32_0, %c0_i32_1 : i32, i32, i32
  }
  func.func @transform_2(%arg0: i32, %arg1: i32) -> (i32, i32) {
    %c0_i32 = arith.constant 0 : i32
    %c0_i32_0 = arith.constant 0 : i32
    %c0_i32_1 = arith.constant 0 : i32
    return %c0_i32, %c0_i32_0 : i32, i32
  }
  func.func @transform_3(%arg0: i32, %arg1: i32) -> (i32, i32, i32) {
    %c0_i32 = arith.constant 0 : i32
    %c0_i32_0 = arith.constant 0 : i32
    return %arg0, %arg1, %c0_i32 : i32, i32, i32
  }
}

</mosaic_0001>

<bundles_post_ra>
// kernel: tpu_custom_call.1
= control target key start
LH: loop header
LB: loop body
LE: loop exit
PB: predicated region body
PF: predicated region fallthrough
CT: control target
= control target key end

     0   :  { %s2376_s12 = smov 0   ;;  %s2378_s13 = smov 0   ;;  %s2942_s0 = inlined_call_operand.vmem [shape: f32[2,156,6], index: 0, kind: input, shape index: {}]   ;;  %s2943_s1 = inlined_call_operand.vmem [shape: bf16[9,6,8], index: 1, kind: input, shape index: {}]   ;;  %s2944_s2 = inlined_call_operand.vmem [shape: f32[1,8], index: 2, kind: input, shape index: {}]   ;;  %s2945_s3 = inlined_call_operand.vmem [shape: f32[2,117,8], index: 3, kind: output, shape index: {}]  }
   0x1   :  { %s2380_s14 = smov 0  }
   0x2 LB: > { %s25_s15 = sadd.s32 1, %s2350_s13  ;;  %p1845_p0 = scmp.ge.s32.totalorder %s2354_s14, 1  ;;  %s2354_s14 = sphi %s2380_s14, %s13_s14   ;;  %s2350_s13 = sphi %s2378_s13, %s2983_s13   ;;  %s2346_s12 = sphi %s2376_s12, %s2982_s12  }
   0x3   : > { %p27_p1 = scmp.ge.s32.totalorder %s25_s15, 2  ;;  %p151_p2 = scmp.lt.s32.totalorder %s2354_s14, 3 }
   0x5   : > { %s2985_s15 = smov (%p27_p1, %s25_s15), 0  ;;  %p152_p3 = pnand %p1845_p0, %p151_p2 }
   0x7   : > { %155 = sbr.rel (%p152_p3) target bundleno = 368 (0x170), region = 32 }
   0xc   : > { %v1863_v0 = vld [vmem:[%s2943_s1 + $0x4] sm:$0x7]  ;;  %vm273_vm0 = vcmask 1042432   ;;  %p179_p4 = scmp.lt.s32.totalorder %s2346_s12, 1  ;;  %v220_v2 = vld [vmem:[%s2943_s1] sm:$0x7] }
   0xd   : > { %2297 = vmatprep.subr.msk.bf16.mxu1 %vm273_vm0, %v1863_v0  ;;  %2296 = vmatprep.subr.msk.bf16.mxu0 %vm273_vm0, %v1863_v0  ;;  %v275_v1 = vsel %vm273_vm0, %v1863_v0, 0  ;;  %v1895_v3 = vld [vmem:[%s2943_s1 + $0x8] sm:$0x7]  ;;  %vm248_vm1 = vcmask 48128   ;;  %v398_v18 = vsel %vm273_vm0, %v220_v2, 0  ;;  %vm1718_vm2 = vcmask 64512  }
   0xe   : > { %2295 = vmatpush3.bf16.msra.mxu1 %v275_v1  ;;  %2133 = vmatpush3.bf16.msra.mxu0 %v275_v1  ;;  %s2987_s12 = smov (!%p179_p4, %s2346_s12), 1  ;;  %v548_v15 = vsel %vm273_vm0, %v1895_v3, 0  ;;  %v1919_v24 = vld [vmem:[%s2943_s1 + $0xc] sm:$0x7]  ;;  %v1943_v27 = vld [vmem:[%s2943_s1 + $0x10] sm:$0x7] }
   0xf   : > { %2298 = vmatprep.subr.msk.bf16.mxu1 %vm273_vm0, %v220_v2  ;;  %2299 = vmatprep.subr.msk.bf16.mxu0 %vm273_vm0, %v1895_v3  ;;  %s2306_s22 = smul.u32 160, %s2987_s12  ;;  %v878_v47 = vsel %vm273_vm0, %v1943_v27, 0  ;;  %v713_v49 = vsel %vm273_vm0, %v1919_v24, 0  ;;  %v2478_v51 = vld [vmem:[%s2943_s1 + $0x14] sm:$0x7] }
  0x10   : > { %v2483_v52 = vld [vmem:[%s2943_s1 + $0x18] sm:$0x7]  ;;  %s2307_s17 = smul.u32 120, %s2987_s12 }
  0x11   : > { %s2414_s25 = scalar_lea.vmem %s2942_s0, %s2306_s22 }
  0x12   : > { %v1848_v4 = vld [vmem:[%s2414_s25 + $0x1] sm:$0xff]  ;;  %v1849_v5 = vld [vmem:[%s2414_s25 + $0x9] sm:$0xff]  ;;  %v1850_v9 = vld [vmem:[%s2414_s25 + $0x11] sm:$0xff]  ;;  %s2863_s19 = scalar_lea.vmem %s2945_s3, %s2307_s17 }
  0x13   : > { %v1856_v6 = vld [vmem:[%s2414_s25 + $0x41] sm:$0xff]  ;;  %v238_v7 = vpack.c.bf16 %v1849_v5, %v1848_v4  ;;  %v1857_v8 = vld [vmem:[%s2414_s25 + $0x49] sm:$0xff]  ;;  %v1851_v10 = vld [vmem:[%s2414_s25 + $0x19] sm:$0xff] }
  0x14   : > { %v242_v11 = vpack.c.bf16 %v1857_v8, %v1856_v6  ;;  %v239_v12 = vpack.c.bf16 %v1851_v10, %v1850_v9  ;;  %v1858_v13 = vld [vmem:[%s2414_s25 + $0x51] sm:$0xff]  ;;  %v1859_v14 = vld [vmem:[%s2414_s25 + $0x59] sm:$0xff]  ;;  %v1852_v16 = vld [vmem:[%s2414_s25 + $0x21] sm:$0xff] }
  0x15   : > { %2134 = vmatprep.mubr.msk.bf16.mxu0 %vm248_vm1, %v238_v7  ;;  %v243_v17 = vpack.c.bf16 %v1859_v14, %v1858_v13  ;;  %v1853_v19 = vld [vmem:[%s2414_s25 + $0x29] sm:$0xff]  ;;  %v1860_v20 = vld [vmem:[%s2414_s25 + $0x61] sm:$0xff]  ;;  %v1854_v25 = vld [vmem:[%s2414_s25 + $0x31] sm:$0xff] }
  0x16   : > { %v1861_v21 = vld [vmem:[%s2414_s25 + $0x69] sm:$0xff]  ;;  %2142 = vmatprep.mubr.msk.bf16.mxu1 %vm248_vm1, %v242_v11  ;;  %2135 = vmatmul.mubr.msk.bf16.vlgmr.msra.gmra.mxu0 %vm248_vm1, %v239_v12  ;;  %v240_v22 = vpack.c.bf16 %v1853_v19, %v1852_v16  ;;  %v1855_v26 = vld [vmem:[%s2414_s25 + $0x39] sm:$0xff]  ;;  %v1862_v28 = vld [vmem:[%s2414_s25 + $0x71] sm:$0xff] }
  0x17   : > { %v244_v23 = vpack.c.bf16 %v1861_v21, %v1860_v20  ;;  %2143 = vmatmul.mubr.msk.bf16.vlgmr.msra.gmra.mxu1 %vm248_vm1, %v243_v17  ;;  %2169 = vmatpush3.bf16.msra.mxu0 %v548_v15  ;;  %v1880_v29 = vld [vmem:[%s2414_s25 + $0x2] sm:$0xff]  ;;  %v1881_v30 = vld [vmem:[%s2414_s25 + $0xa] sm:$0xff]  ;;  %v241_v33 = vpack.c.bf16 %v1855_v26, %v1854_v25  ;;  %v245_v34 = vpack.c.bf16 %v1862_v28, %v1862_v28  ;;  %v1882_v37 = vld [vmem:[%s2414_s25 + $0x12] sm:$0xff] }
  0x18   : > { %2151 = vmatpush3.bf16.msra.mxu1 %v398_v18  ;;  %2138 = vmatprep.mubr.msk.bf16.mxu0 %vm248_vm1, %v240_v22  ;;  %v197_v31 = vld [vmem:[%s2414_s25] sm:$0xff]  ;;  %v198_v32 = vld [vmem:[%s2414_s25 + $0x8] sm:$0xff]  ;;  %v513_v35 = vpack.c.bf16 %v1881_v30, %v1880_v29  ;;  %v199_v39 = vld [vmem:[%s2414_s25 + $0x10] sm:$0xff] }
  0x19   : > { %2146 = vmatprep.mubr.msk.bf16.mxu1 %vm248_vm1, %v244_v23  ;;  %2300 = vmatprep.subr.msk.bf16.mxu1 %vm273_vm0, %v1919_v24  ;;  %v212_v36 = vpack.c.bf16 %v198_v32, %v197_v31  ;;  %v2456_v38 = vld [vmem:[%s2414_s25 + $0x1a] sm:$0xff]  ;;  %v202_v42 = vld [vmem:[%s2414_s25 + $0x28] sm:$0xff]  ;;  %v203_v53 = vld [vmem:[%s2414_s25 + $0x30] sm:$0xff] }
  0x1a   : > { %2301 = vmatprep.subr.msk.bf16.mxu0 %vm273_vm0, %v1943_v27  ;;  %v200_v40 = vld [vmem:[%s2414_s25 + $0x18] sm:$0xff]  ;;  %v201_v41 = vld [vmem:[%s2414_s25 + $0x20] sm:$0xff]  ;;  %v514_v43 = vpack.c.bf16 %v2456_v38, %v1882_v37  ;;  %v2468_v45 = vld [vmem:[%s2414_s25 + $0x2a] sm:$0xff] }
  0x1b   : > { %v2465_v44 = vld [vmem:[%s2414_s25 + $0x22] sm:$0xff]  ;;  %v213_v46 = vpack.c.bf16 %v200_v40, %v199_v39  ;;  %v214_v48 = vpack.c.bf16 %v202_v42, %v201_v41  ;;  %v2488_v54 = vld [vmem:[%s2414_s25 + $0x32] sm:$0xff]  ;;  %v2491_v55 = vld [vmem:[%s2414_s25 + $0x3a] sm:$0xff] }
  0x1c   : > { %v515_v50 = vpack.c.bf16 %v2468_v45, %v2465_v44  ;;  %v204_v56 = vld [vmem:[%s2414_s25 + $0x38] sm:$0xff]  ;;  %v2496_v57 = vld [vmem:[%s2414_s25 + $0x42] sm:$0xff]  ;;  %v2499_v58 = vld [vmem:[%s2414_s25 + $0x4a] sm:$0xff]  ;;  %v516_v61 = vpack.c.bf16 %v2491_v55, %v2488_v54 }
  0x1d   : > { %v205_v59 = vld [vmem:[%s2414_s25 + $0x40] sm:$0xff]  ;;  %v206_v60 = vld [vmem:[%s2414_s25 + $0x48] sm:$0xff]  ;;  %v215_v62 = vpack.c.bf16 %v204_v56, %v203_v53  ;;  %v517_v63 = vpack.c.bf16 %v2499_v58, %v2496_v57  ;;  %v207_v1 = vld [vmem:[%s2414_s25 + $0x50] sm:$0xff] }
  0x1e   : > { %2139 = vmatmul.mubr.msk.bf16.gmra.mxu0 %vm248_vm1, %v241_v33  ;;  %v216_v0 = vpack.c.bf16 %v206_v60, %v205_v59  ;;  %v2517_v2 = vld [vmem:[%s2414_s25 + $0x52] sm:$0xff]  ;;  %v2520_v3 = vld [vmem:[%s2414_s25 + $0x5a] sm:$0xff]  ;;  %v2525_v5 = vld [vmem:[%s2414_s25 + $0x62] sm:$0xff]  ;;  %v1208_v33 = vsel %vm273_vm0, %v2483_v52, 0 }
  0x1f   : > { %2147 = vmatmul.mubr.msk.bf16.gmra.mxu1 %vm248_vm1, %v245_v34  ;;  %2170 = vmatprep.mubr.msk.bf16.mxu0 %vm248_vm1, %v513_v35  ;;  %v208_v4 = vld [vmem:[%s2414_s25 + $0x58] sm:$0xff]  ;;  %v2528_v6 = vld [vmem:[%s2414_s25 + $0x6a] sm:$0xff]  ;;  %v209_v7 = vld [vmem:[%s2414_s25 + $0x60] sm:$0xff]  ;;  %v518_v9 = vpack.c.bf16 %v2520_v3, %v2517_v2  ;;  %v1043_v35 = vsel %vm273_vm0, %v2478_v51, 0 }
  0x20   : > { %2152 = vmatprep.mubr.msk.bf16.mxu1 %vm248_vm1, %v212_v36  ;;  %v210_v8 = vld [vmem:[%s2414_s25 + $0x68] sm:$0xff]  ;;  %v217_v10 = vpack.c.bf16 %v208_v4, %v207_v1  ;;  %v519_v11 = vpack.c.bf16 %v2528_v6, %v2525_v5  ;;  %v2540_v13 = vld [vmem:[%s2414_s25 + $0x72] sm:$0xff]  ;;  %v1930_v23 = vld [vmem:[%s2414_s25 + $0x1e] sm:$0xff] }
  0x21   : > { %v218_v12 = vpack.c.bf16 %v210_v8, %v209_v7  ;;  %v211_v14 = vld [vmem:[%s2414_s25 + $0x70] sm:$0xff]  ;;  %v520_v19 = vpack.c.bf16 %v2540_v13, %v2540_v13  ;;  %v1931_v24 = vld [vmem:[%s2414_s25 + $0x26] sm:$0xff]  ;;  %v1906_v25 = vld [vmem:[%s2414_s25 + $0x1d] sm:$0xff] }
  0x22   : > { %v1928_v15 = vld [vmem:[%s2414_s25 + $0xe] sm:$0xff]  ;;  %v1929_v16 = vld [vmem:[%s2414_s25 + $0x16] sm:$0xff]  ;;  %v219_v20 = vpack.c.bf16 %v211_v14, %v211_v14  ;;  %v1907_v26 = vld [vmem:[%s2414_s25 + $0x25] sm:$0xff]  ;;  %v844_v29 = vpack.c.bf16 %v1931_v24, %v1930_v23 }
  0x23   : > { %v1904_v17 = vld [vmem:[%s2414_s25 + $0xd] sm:$0xff]  ;;  %v1905_v18 = vld [vmem:[%s2414_s25 + $0x15] sm:$0xff]  ;;  %v843_v21 = vpack.c.bf16 %v1929_v16, %v1928_v15  ;;  %v679_v32 = vpack.c.bf16 %v1907_v26, %v1906_v25  ;;  %v2039_v39 = vld [vmem:[%s2943_s1 + $0x20] sm:$0x7]  ;;  %v1175_v26 = vpack.c.bf16 %v2496_v57, %v2491_v55  ;;  %v1176_v57 = vpack.c.bf16 %v2517_v2, %v2499_v58 }
  0x24   : > { %v678_v22 = vpack.c.bf16 %v1905_v18, %v1904_v17  ;;  %v1908_v27 = vld [vmem:[%s2414_s25 + $0x2d] sm:$0xff]  ;;  %v1909_v28 = vld [vmem:[%s2414_s25 + $0x35] sm:$0xff]  ;;  %v1910_v40 = vld [vmem:[%s2414_s25 + $0x3d] sm:$0xff]  ;;  %v1173_v17 = vpack.c.bf16 %v2465_v44, %v2456_v38  ;;  %v1174_v38 = vpack.c.bf16 %v2488_v54, %v2468_v45  ;;  %v1538_v23 = vsel %vm273_vm0, %v2039_v39, 0 }
  0x25   : > { %v1932_v30 = vld [vmem:[%s2414_s25 + $0x2e] sm:$0xff]  ;;  %v1933_v31 = vld [vmem:[%s2414_s25 + $0x36] sm:$0xff]  ;;  %v680_v34 = vpack.c.bf16 %v1909_v28, %v1908_v27  ;;  %v1934_v41 = vld [vmem:[%s2414_s25 + $0x3e] sm:$0xff] }
  0x26   : > { %2171 = vmatmul.mubr.msk.bf16.vlgmr.msra.gmra.mxu0 %vm248_vm1, %v514_v43  ;;  %v845_v36 = vpack.c.bf16 %v1933_v31, %v1932_v30  ;;  %v2015_v37 = vld [vmem:[%s2943_s1 + $0x1c] sm:$0x7]  ;;  %v1935_v42 = vld [vmem:[%s2414_s25 + $0x46] sm:$0xff]  ;;  %v1960_v27 = vld [vmem:[%s2414_s25 + $0x4f] sm:$0xff] }
  0x27   : > { %2153 = vmatmul.mubr.msk.bf16.vlgmr.msra.gmra.mxu1 %vm248_vm1, %v213_v46  ;;  %2205 = vmatpush3.bf16.msra.mxu0 %v878_v47  ;;  %v1911_v43 = vld [vmem:[%s2414_s25 + $0x45] sm:$0xff]  ;;  %v1936_v46 = vld [vmem:[%s2414_s25 + $0x4e] sm:$0xff]  ;;  %v1937_v47 = vld [vmem:[%s2414_s25 + $0x56] sm:$0xff]  ;;  %v1373_v25 = vsel %vm273_vm0, %v2015_v37, 0 }
  0x28   : > { %2187 = vmatpush3.bf16.msra.mxu1 %v713_v49  ;;  %2156 = vmatprep.mubr.msk.bf16.mxu1 %vm248_vm1, %v214_v48  ;;  %v1912_v48 = vld [vmem:[%s2414_s25 + $0x4d] sm:$0xff]  ;;  %v1913_v49 = vld [vmem:[%s2414_s25 + $0x55] sm:$0xff]  ;;  %v1914_v56 = vld [vmem:[%s2414_s25 + $0x5d] sm:$0xff] }
  0x29   : > { %2174 = vmatprep.mubr.msk.bf16.mxu0 %vm248_vm1, %v515_v50  ;;  %2302 = vmatprep.subr.msk.bf16.mxu1 %vm273_vm0, %v2478_v51  ;;  %v846_v50 = vpack.c.bf16 %v1935_v42, %v1934_v41  ;;  %v681_v51 = vpack.c.bf16 %v1911_v43, %v1910_v40  ;;  %v682_v53 = vpack.c.bf16 %v1913_v49, %v1912_v48  ;;  %v1938_v59 = vld [vmem:[%s2414_s25 + $0x5e] sm:$0xff]  ;;  %v1939_v60 = vld [vmem:[%s2414_s25 + $0x66] sm:$0xff]  ;;  %v1917_v1 = vld [vmem:[%s2414_s25 + $0x75] sm:$0xff] }
  0x2a   : > { %2303 = vmatprep.subr.msk.bf16.mxu0 %vm273_vm0, %v2483_v52  ;;  %v847_v52 = vpack.c.bf16 %v1937_v47, %v1936_v46  ;;  %v848_v4 = vpack.c.bf16 %v1939_v60, %v1938_v59  ;;  %v1953_v14 = vld [vmem:[%s2414_s25 + $0x17] sm:$0xff]  ;;  %v1958_v45 = vld [vmem:[%s2414_s25 + $0x3f] sm:$0xff]  ;;  %v1959_v54 = vld [vmem:[%s2414_s25 + $0x47] sm:$0xff] }
  0x2b   : > { %v1961_v55 = vld [vmem:[%s2414_s25 + $0x57] sm:$0xff]  ;;  %v1011_v28 = vpack.c.bf16 %v1959_v54, %v1958_v45  ;;  %v1962_v31 = vld [vmem:[%s2414_s25 + $0x5f] sm:$0xff]  ;;  %v2002_v48 = vld [vmem:[%s2414_s25 + $0x2b] sm:$0xff] }
  0x2c   : > { %v1012_v30 = vpack.c.bf16 %v1961_v55, %v1960_v27  ;;  %v1988_v58 = vld [vmem:[%s2414_s25 + $0x7a] sm:$0xff]  ;;  %v1989_v2 = vld [vmem:[%s2414_s25 + $0x82] sm:$0xff]  ;;  %v2026_v49 = vld [vmem:[%s2414_s25 + $0x2c] sm:$0xff] }
  0x2d   : > { %v2024_v40 = vld [vmem:[%s2414_s25 + $0x1c] sm:$0xff]  ;;  %v2038_v45 = vld [vmem:[%s2414_s25 + $0x8c] sm:$0xff] }
  0x2e   : > { %2175 = vmatmul.mubr.msk.bf16.gmra.mxu0 %vm248_vm1, %v516_v61  ;;  %v1915_v61 = vld [vmem:[%s2414_s25 + $0x65] sm:$0xff]  ;;  %v1510_v27 = vpack.c.bf16 %v2038_v45, %v2038_v45 }
  0x2f   : > { %2157 = vmatmul.mubr.msk.bf16.gmra.mxu1 %vm248_vm1, %v215_v62  ;;  %2178 = vmatprep.mubr.msk.bf16.mxu0 %vm248_vm1, %v517_v63  ;;  %v1940_v62 = vld [vmem:[%s2414_s25 + $0x6e] sm:$0xff]  ;;  %v1941_v63 = vld [vmem:[%s2414_s25 + $0x76] sm:$0xff]  ;;  %v683_v7 = vpack.c.bf16 %v1915_v61, %v1914_v56  ;;  %v2001_v41 = vld [vmem:[%s2414_s25 + $0x23] sm:$0xff] }
  0x30   : > { %2160 = vmatprep.mubr.msk.bf16.mxu1 %vm248_vm1, %v216_v0  ;;  %v1916_v0 = vld [vmem:[%s2414_s25 + $0x6d] sm:$0xff]  ;;  %v849_v8 = vpack.c.bf16 %v1941_v63, %v1940_v62  ;;  %v2004_v56 = vld [vmem:[%s2414_s25 + $0x3b] sm:$0xff]  ;;  %v2005_v59 = vld [vmem:[%s2414_s25 + $0x43] sm:$0xff] }
  0x31   : > { %v1340_v63 = vpack.c.bf16 %v2005_v59, %v2004_v56  ;;  %v2014_v54 = vld [vmem:[%s2414_s25 + $0x8b] sm:$0xff] }
  0x32   : > { %v1345_v55 = vpack.c.bf16 %v2014_v54, %v2014_v54 }
  0x36   : > { %2179 = vmatmul.mubr.msk.bf16.gmra.mxu0 %vm248_vm1, %v518_v9  ;;  %v684_v9 = vpack.c.bf16 %v1917_v1, %v1916_v0  ;;  %v2006_v0 = vld [vmem:[%s2414_s25 + $0x4b] sm:$0xff] }
  0x37   : > { %2161 = vmatmul.mubr.msk.bf16.gmra.mxu1 %vm248_vm1, %v217_v10  ;;  %2182 = vmatprep.mubr.msk.bf16.mxu0 %vm248_vm1, %v519_v11  ;;  %v1942_v10 = vld [vmem:[%s2414_s25 + $0x7e] sm:$0xff]  ;;  %v2030_v1 = vld [vmem:[%s2414_s25 + $0x4c] sm:$0xff] }
  0x38   : > { %2164 = vmatprep.mubr.msk.bf16.mxu1 %vm248_vm1, %v218_v12  ;;  %v1918_v11 = vld [vmem:[%s2414_s25 + $0x7d] sm:$0xff]  ;;  %v1952_v12 = vld [vmem:[%s2414_s25 + $0xf] sm:$0xff]  ;;  %v850_v15 = vpack.c.bf16 %v1942_v10, %v1942_v10 }
  0x39   : > { %v685_v16 = vpack.c.bf16 %v1918_v11, %v1918_v11  ;;  %v1008_v18 = vpack.c.bf16 %v1953_v14, %v1952_v12  ;;  %v2008_v10 = vld [vmem:[%s2414_s25 + $0x5b] sm:$0xff]  ;;  %v2009_v11 = vld [vmem:[%s2414_s25 + $0x63] sm:$0xff] }
  0x3e   : > { %2183 = vmatmul.mubr.msk.bf16.gmra.mxu0 %vm248_vm1, %v520_v19  ;;  %v1954_v19 = vld [vmem:[%s2414_s25 + $0x1f] sm:$0xff] }
  0x3f   : > { %2165 = vmatmul.mubr.msk.bf16.gmra.mxu1 %vm248_vm1, %v219_v20  ;;  %2206 = vmatprep.mubr.msk.bf16.mxu0 %vm248_vm1, %v843_v21  ;;  %v1955_v20 = vld [vmem:[%s2414_s25 + $0x27] sm:$0xff]  ;;  %v1956_v21 = vld [vmem:[%s2414_s25 + $0x2f] sm:$0xff] }
  0x40   : > { %2188 = vmatprep.mubr.msk.bf16.mxu1 %vm248_vm1, %v678_v22  ;;  %v1957_v22 = vld [vmem:[%s2414_s25 + $0x37] sm:$0xff]  ;;  %v1009_v44 = vpack.c.bf16 %v1955_v20, %v1954_v19 }
  0x41   : > { %v1010_v24 = vpack.c.bf16 %v1957_v22, %v1956_v21  ;;  %v2035_v19 = vld [vmem:[%s2414_s25 + $0x74] sm:$0xff]  ;;  %v2036_v21 = vld [vmem:[%s2414_s25 + $0x7c] sm:$0xff]  ;;  %v2037_v22 = vld [vmem:[%s2414_s25 + $0x84] sm:$0xff] }
  0x42   : > { %v2011_v20 = vld [vmem:[%s2414_s25 + $0x73] sm:$0xff] }
  0x46   : > { %2207 = vmatmul.mubr.msk.bf16.vlgmr.msra.gmra.mxu0 %vm248_vm1, %v844_v29  ;;  %v1177_v29 = vpack.c.bf16 %v2525_v5, %v2520_v3  ;;  %v1964_v3 = vld [vmem:[%s2414_s25 + $0x6f] sm:$0xff]  ;;  %v1965_v5 = vld [vmem:[%s2414_s25 + $0x77] sm:$0xff] }
  0x47   : > { %2189 = vmatmul.mubr.msk.bf16.vlgmr.msra.gmra.mxu1 %vm248_vm1, %v679_v32  ;;  %2241 = vmatpush3.bf16.msra.mxu0 %v1208_v33  ;;  %v1963_v32 = vld [vmem:[%s2414_s25 + $0x67] sm:$0xff]  ;;  %v1178_v33 = vpack.c.bf16 %v2540_v13, %v2528_v6  ;;  %v2000_v13 = vld [vmem:[%s2414_s25 + $0x1b] sm:$0xff] }
  0x48   : > { %2223 = vmatpush3.bf16.msra.mxu1 %v1043_v35  ;;  %2192 = vmatprep.mubr.msk.bf16.mxu1 %vm248_vm1, %v680_v34  ;;  %v1013_v34 = vpack.c.bf16 %v1963_v32, %v1962_v31  ;;  %v1179_v35 = vpack.c.bf16 %v1989_v2, %v1988_v58  ;;  %v2025_v6 = vld [vmem:[%s2414_s25 + $0x24] sm:$0xff]  ;;  %v1338_v47 = vpack.c.bf16 %v2001_v41, %v2000_v13 }
  0x49   : > { %2210 = vmatprep.mubr.msk.bf16.mxu0 %vm248_vm1, %v845_v36  ;;  %2304 = vmatprep.subr.msk.bf16.mxu1 %vm273_vm0, %v2015_v37  ;;  %v1014_v36 = vpack.c.bf16 %v1965_v5, %v1964_v3  ;;  %v1990_v37 = vld [vmem:[%s2414_s25 + $0x8a] sm:$0xff]  ;;  %v1503_v46 = vpack.c.bf16 %v2025_v6, %v2024_v40 }
  0x4a   : > { %2305 = vmatprep.subr.msk.bf16.mxu0 %vm273_vm0, %v2039_v39  ;;  %v1966_v39 = vld [vmem:[%s2414_s25 + $0x7f] sm:$0xff]  ;;  %v1180_v42 = vpack.c.bf16 %v1990_v37, %v1990_v37 }
  0x4b   : > { %v1015_v43 = vpack.c.bf16 %v1966_v39, %v1966_v39 }
  0x4e   : > { %2211 = vmatmul.mubr.msk.bf16.gmra.mxu0 %vm248_vm1, %v846_v50  ;;  %v2027_v50 = vld [vmem:[%s2414_s25 + $0x34] sm:$0xff] }
  0x4f   : > { %2193 = vmatmul.mubr.msk.bf16.gmra.mxu1 %vm248_vm1, %v681_v51  ;;  %2214 = vmatprep.mubr.msk.bf16.mxu0 %vm248_vm1, %v847_v52  ;;  %v2003_v51 = vld [vmem:[%s2414_s25 + $0x33] sm:$0xff]  ;;  %v2028_v52 = vld [vmem:[%s2414_s25 + $0x3c] sm:$0xff]  ;;  %v1504_v60 = vpack.c.bf16 %v2027_v50, %v2026_v49 }
  0x50   : > { %2196 = vmatprep.mubr.msk.bf16.mxu1 %vm248_vm1, %v682_v53  ;;  %v2029_v53 = vld [vmem:[%s2414_s25 + $0x44] sm:$0xff]  ;;  %v1339_v61 = vpack.c.bf16 %v2003_v51, %v2002_v48 }
  0x51   : > { %v1505_v62 = vpack.c.bf16 %v2029_v53, %v2028_v52 }
  0x56   : > { %2215 = vmatmul.mubr.msk.bf16.gmra.mxu0 %vm248_vm1, %v848_v4  ;;  %v2031_v4 = vld [vmem:[%s2414_s25 + $0x54] sm:$0xff] }
  0x57   : > { %2197 = vmatmul.mubr.msk.bf16.gmra.mxu1 %vm248_vm1, %v683_v7  ;;  %2218 = vmatprep.mubr.msk.bf16.mxu0 %vm248_vm1, %v849_v8  ;;  %v2007_v7 = vld [vmem:[%s2414_s25 + $0x53] sm:$0xff]  ;;  %v2032_v8 = vld [vmem:[%s2414_s25 + $0x5c] sm:$0xff]  ;;  %v1506_v12 = vpack.c.bf16 %v2031_v4, %v2030_v1 }
  0x58   : > { %2200 = vmatprep.mubr.msk.bf16.mxu1 %vm248_vm1, %v684_v9  ;;  %v2033_v9 = vld [vmem:[%s2414_s25 + $0x64] sm:$0xff]  ;;  %v1341_v14 = vpack.c.bf16 %v2007_v7, %v2006_v0 }
  0x5e   : > { %2219 = vmatmul.mubr.msk.bf16.gmra.mxu0 %vm248_vm1, %v850_v15  ;;  %v1507_v15 = vpack.c.bf16 %v2033_v9, %v2032_v8 }
  0x5f   : > { %2201 = vmatmul.mubr.msk.bf16.gmra.mxu1 %vm248_vm1, %v685_v16  ;;  %2242 = vmatprep.mubr.msk.bf16.mxu0 %vm248_vm1, %v1173_v17  ;;  %v1342_v16 = vpack.c.bf16 %v2009_v11, %v2008_v10  ;;  %v2010_v17 = vld [vmem:[%s2414_s25 + $0x6b] sm:$0xff] }
  0x60   : > { %2224 = vmatprep.mubr.msk.bf16.mxu1 %vm248_vm1, %v1008_v18  ;;  %v2034_v18 = vld [vmem:[%s2414_s25 + $0x6c] sm:$0xff] }
  0x66   : > { %2243 = vmatmul.mubr.msk.bf16.vlgmr.msra.gmra.mxu0 %vm248_vm1, %v1174_v38  ;;  %v2012_v38 = vld [vmem:[%s2414_s25 + $0x7b] sm:$0xff] }
  0x67   : > { %2225 = vmatmul.mubr.msk.bf16.vlgmr.msra.gmra.mxu1 %vm248_vm1, %v1009_v44  ;;  %2277 = vmatpush3.bf16.msra.mxu0 %v1538_v23  ;;  %v2013_v44 = vld [vmem:[%s2414_s25 + $0x83] sm:$0xff]  ;;  %v1508_v23 = vpack.c.bf16 %v2035_v19, %v2034_v18 }
  0x68   : > { %2259 = vmatpush3.bf16.msra.mxu1 %v1373_v25  ;;  %2228 = vmatprep.mubr.msk.bf16.mxu1 %vm248_vm1, %v1010_v24  ;;  %v1343_v24 = vpack.c.bf16 %v2011_v20, %v2010_v17  ;;  %v1509_v25 = vpack.c.bf16 %v2037_v22, %v2036_v21 }
  0x69   : > { %2246 = vmatprep.mubr.msk.bf16.mxu0 %vm248_vm1, %v1175_v26  ;;  %v1344_v26 = vpack.c.bf16 %v2013_v44, %v2012_v38 }
  0x6e   : > { %2247 = vmatmul.mubr.msk.bf16.gmra.mxu0 %vm248_vm1, %v1176_v57 }
  0x6f   : > { %2229 = vmatmul.mubr.msk.bf16.gmra.mxu1 %vm248_vm1, %v1011_v28  ;;  %2250 = vmatprep.mubr.msk.bf16.mxu0 %vm248_vm1, %v1177_v29 }
  0x70   : > { %2232 = vmatprep.mubr.msk.bf16.mxu1 %vm248_vm1, %v1012_v30 }
  0x76   : > { %2251 = vmatmul.mubr.msk.bf16.gmra.mxu0 %vm248_vm1, %v1178_v33 }
  0x77   : > { %2233 = vmatmul.mubr.msk.bf16.gmra.mxu1 %vm248_vm1, %v1013_v34  ;;  %2254 = vmatprep.mubr.msk.bf16.mxu0 %vm248_vm1, %v1179_v35 }
  0x78   : > { %2236 = vmatprep.mubr.msk.bf16.mxu1 %vm248_vm1, %v1014_v36 }
  0x7e   : > { %2255 = vmatmul.mubr.msk.bf16.gmra.mxu0 %vm248_vm1, %v1180_v42 }
  0x7f   : > { %2237 = vmatmul.mubr.msk.bf16.gmra.mxu1 %vm248_vm1, %v1015_v43  ;;  %2278 = vmatprep.mubr.msk.bf16.mxu0 %vm248_vm1, %v1503_v46 }
  0x80   : > { %2260 = vmatprep.mubr.msk.bf16.mxu1 %vm248_vm1, %v1338_v47 }
  0x86   : > { %2279 = vmatmul.mubr.msk.bf16.vlgmr.msra.gmra.mxu0 %vm248_vm1, %v1504_v60 }
  0x87   : > { %2261 = vmatmul.mubr.msk.bf16.vlgmr.msra.gmra.mxu1 %vm248_vm1, %v1339_v61  ;;  %2282 = vmatprep.mubr.msk.bf16.mxu0 %vm248_vm1, %v1505_v62 }
  0x88   : > { %2264 = vmatprep.mubr.msk.bf16.mxu1 %vm248_vm1, %v1340_v63 }
  0x8e   : > { %2283 = vmatmul.mubr.msk.bf16.gmra.mxu0 %vm248_vm1, %v1506_v12 }
  0x8f   : > { %2265 = vmatmul.mubr.msk.bf16.gmra.mxu1 %vm248_vm1, %v1341_v14  ;;  %2286 = vmatprep.mubr.msk.bf16.mxu0 %vm248_vm1, %v1507_v15 }
  0x90   : > { %2268 = vmatprep.mubr.msk.bf16.mxu1 %vm248_vm1, %v1342_v16 }
  0x96   : > { %2287 = vmatmul.mubr.msk.bf16.gmra.mxu0 %vm248_vm1, %v1508_v23 }
  0x97   : > { %2269 = vmatmul.mubr.msk.bf16.gmra.mxu1 %vm248_vm1, %v1343_v24  ;;  %2290 = vmatprep.mubr.msk.bf16.mxu0 %vm248_vm1, %v1509_v25 }
  0x98   : > { %2272 = vmatprep.mubr.msk.bf16.mxu1 %vm248_vm1, %v1344_v26 }
  0x9e   : > { %2291 = vmatmul.mubr.msk.bf16.gmra.mxu0 %vm248_vm1, %v1510_v27 }
  0x9f   : > { %2273 = vmatmul.mubr.msk.bf16.gmra.mxu1 %vm248_vm1, %v1345_v55 }
  0xd6   : > { %v2136_v57 = vpop.f32.mrf.mxu0 }
  0xd7   : > { %v2144_v28 = vpop.f32.mrf.mxu1 }
  0xd8   : > { %v311_v29 = vpop.f32.mrf.mxu0 }
  0xd9   : > { %v343_v30 = vpop.f32.mrf.mxu1 }
  0xda   : > { %v2137_v31 = vpop.f32.mrf.mxu0 }
  0xdb   : > { %v2145_v32 = vpop.f32.mrf.mxu1 }
  0xdc   : > { %v314_v58 = vpop.f32.mrf.mxu0 }
  0xdd   : > { %v346_v2 = vpop.f32.mrf.mxu1 }
  0xde   : > { %v2140_v3 = vpop.f32.mrf.mxu0 }
  0xdf   : > { %v2148_v5 = vpop.f32.mrf.mxu1 }
  0xe0   : > { %v327_v33 = vpop.f32.mrf.mxu0 }
  0xe1   : > { %v359_v34 = vpop.f32.mrf.mxu1 }
  0xe2   : > { %v2141_v35 = vpop.f32.mrf.mxu0 }
  0xe3   : > { %v2149_v36 = vpop.f32.mrf.mxu1 }
  0xe4   : > { %v330_v37 = vpop.f32.mrf.mxu0 }
  0xe5   : > { %v362_v39 = vpop.f32.mrf.mxu1 }
  0xe6   : > { %v2172_v40 = vpop.f32.mrf.mxu0 }
  0xe7   : > { %v2154_v6 = vpop.f32.mrf.mxu1 }
  0xe8   : > { %v443_v13 = vadd.f32 %v2154_v6, %v2136_v57  ;;  %v584_v41 = vpop.f32.mrf.mxu0 }
  0xe9   : > { %v434_v42 = vpop.f32.mrf.mxu1 }
  0xea   : > { %v2700_v43 = vadd.f32 %v2172_v40, %v443_v13  ;;  %v435_v46 = vadd.f32 %v434_v42, %v311_v29  ;;  %v2173_v47 = vpop.f32.mrf.mxu0 }
  0xeb   : > { %v2155_v48 = vpop.f32.mrf.mxu1 }
  0xec   : > { %v2702_v49 = vadd.f32 %v584_v41, %v435_v46  ;;  %v446_v50 = vadd.f32 %v2155_v48, %v2137_v31  ;;  %v587_v51 = vpop.f32.mrf.mxu0 }
  0xed   : > { %v437_v52 = vpop.f32.mrf.mxu1 }
  0xee   : > { %v2704_v53 = vadd.f32 %v2173_v47, %v446_v50  ;;  %v438_v56 = vadd.f32 %v437_v52, %v314_v58  ;;  %v2176_v59 = vpop.f32.mrf.mxu0 }
  0xef   : > { %v2158_v60 = vpop.f32.mrf.mxu1 }
  0xf0   : > { %v2706_v61 = vadd.f32 %v587_v51, %v438_v56  ;;  %v459_v62 = vadd.f32 %v2158_v60, %v2140_v3  ;;  %v600_v63 = vpop.f32.mrf.mxu0 }
  0xf1   : > { %v450_v0 = vpop.f32.mrf.mxu1 }
  0xf2   : > { %v2708_v1 = vadd.f32 %v2176_v59, %v459_v62  ;;  %v451_v4 = vadd.f32 %v450_v0, %v327_v33  ;;  %v2177_v7 = vpop.f32.mrf.mxu0 }
  0xf3   : > { %v2159_v8 = vpop.f32.mrf.mxu1 }
  0xf4   : > { %v2710_v9 = vadd.f32 %v600_v63, %v451_v4  ;;  %v462_v10 = vadd.f32 %v2159_v8, %v2141_v35  ;;  %v603_v11 = vpop.f32.mrf.mxu0 }
  0xf5   : > { %v453_v12 = vpop.f32.mrf.mxu1 }
  0xf6   : > { %v2712_v14 = vadd.f32 %v2177_v7, %v462_v10  ;;  %v454_v15 = vadd.f32 %v453_v12, %v330_v37  ;;  %v2180_v16 = vpop.f32.mrf.mxu0 }
  0xf7   : > { %v2162_v17 = vpop.f32.mrf.mxu1 }
  0xf8   : > { %v2714_v18 = vadd.f32 %v603_v11, %v454_v15  ;;  %v475_v19 = vadd.f32 %v2162_v17, %v2144_v28  ;;  %v616_v20 = vpop.f32.mrf.mxu0 }
  0xf9   : > { %v466_v21 = vpop.f32.mrf.mxu1 }
  0xfa   : > { %v2716_v22 = vadd.f32 %v2180_v16, %v475_v19  ;;  %v467_v38 = vadd.f32 %v466_v21, %v343_v30  ;;  %v2181_v44 = vpop.f32.mrf.mxu0 }
  0xfb   : > { %v2163_v23 = vpop.f32.mrf.mxu1 }
  0xfc   : > { %v2718_v24 = vadd.f32 %v616_v20, %v467_v38  ;;  %v478_v25 = vadd.f32 %v2163_v23, %v2145_v32  ;;  %v619_v26 = vpop.f32.mrf.mxu0 }
  0xfd   : > { %v469_v45 = vpop.f32.mrf.mxu1 }
  0xfe   : > { %v2720_v54 = vadd.f32 %v2181_v44, %v478_v25  ;;  %v470_v27 = vadd.f32 %v469_v45, %v346_v2  ;;  %v2184_v55 = vpop.f32.mrf.mxu0 }
  0xff   : > { %v2166_v57 = vpop.f32.mrf.mxu1 }
 0x100   : > { %v2722_v29 = vadd.f32 %v619_v26, %v470_v27  ;;  %v491_v28 = vadd.f32 %v2166_v57, %v2148_v5  ;;  %v632_v31 = vpop.f32.mrf.mxu0 }
 0x101   : > { %v482_v58 = vpop.f32.mrf.mxu1 }
 0x102   : > { %v2724_v3 = vadd.f32 %v2184_v55, %v491_v28  ;;  %v483_v30 = vadd.f32 %v482_v58, %v359_v34  ;;  %v2185_v33 = vpop.f32.mrf.mxu0 }
 0x103   : > { %v2167_v35 = vpop.f32.mrf.mxu1 }
 0x104   : > { %v2726_v36 = vadd.f32 %v632_v31, %v483_v30  ;;  %v635_v32 = vpop.f32.mrf.mxu0 }
 0x105   : > { %v485_v37 = vpop.f32.mrf.mxu1 }
 0x106   : > { %v486_v40 = vadd.f32 %v485_v37, %v362_v39  ;;  %v2208_v6 = vpop.f32.mrf.mxu0 }
 0x107   : > { %v2190_v13 = vpop.f32.mrf.mxu1 }
 0x108   : > { %v2728_v2 = vadd.f32 %v635_v32, %v486_v40  ;;  %v914_v41 = vpop.f32.mrf.mxu0 }
 0x109   : > { %v749_v42 = vpop.f32.mrf.mxu1 }
 0x10a   : > { %2946 = vst [vmem:[#allocation2_spill] sm:$0xff] %v2728_v2  ;;  %v2730_v46 = vpop.f32.mrf.mxu0  ;;  %v813_v2 = vadd.f32 %v2190_v13, %v2700_v43 }
 0x10b   : > { %v2191_v5 = vpop.f32.mrf.mxu1 }
 0x10c   : > { %v2732_v47 = vpop.f32.mrf.mxu0 }
 0x10d   : > { %v752_v48 = vpop.f32.mrf.mxu1 }
 0x10e   : > { %v2734_v34 = vpop.f32.mrf.mxu0  ;;  %v812_v43 = vadd.f32 %v752_v48, %v2706_v61 }
 0x10f   : > { %v2194_v50 = vpop.f32.mrf.mxu1 }
 0x110   : > { %v2736_v51 = vpop.f32.mrf.mxu0  ;;  %v977_v61 = vadd.f32 %v2732_v47, %v812_v43 }
 0x111   : > { %v765_v52 = vpop.f32.mrf.mxu1 }
 0x112   : > { %v2738_v56 = vpop.f32.mrf.mxu0 }
 0x113   : > { %v2195_v39 = vpop.f32.mrf.mxu1 }
 0x114   : > { %v2740_v59 = vpop.f32.mrf.mxu0 }
 0x115   : > { %v768_v60 = vpop.f32.mrf.mxu1 }
 0x116   : > { %v2742_v62 = vpop.f32.mrf.mxu0 }
 0x117   : > { %v2198_v63 = vpop.f32.mrf.mxu1 }
 0x118   : > { %v2744_v0 = vpop.f32.mrf.mxu0 }
 0x119   : > { %v2746_v4 = vpop.f32.mrf.mxu1 }
 0x11a   : > { %v2748_v7 = vpop.f32.mrf.mxu0 }
 0x11b   : > { %v2750_v8 = vpop.f32.mrf.mxu1 }
 0x11c   : > { %v2752_v10 = vpop.f32.mrf.mxu0 }
 0x11d   : > { %v2754_v11 = vpop.f32.mrf.mxu1 }
 0x11e   : > { %v2756_v12 = vpop.f32.mrf.mxu0 }
 0x11f   : > { %v2758_v15 = vpop.f32.mrf.mxu1 }
 0x120   : > { %v2760_v16 = vpop.f32.mrf.mxu0 }
 0x121   : > { %2947 = vst [vmem:[#allocation3_spill] sm:$0xff] %v2760_v16  ;;  %v2762_v17 = vpop.f32.mrf.mxu1 }
 0x122   : > { %v2221_v19 = vpop.f32.mrf.mxu0 }
 0x123   : > { %v2203_v20 = vpop.f32.mrf.mxu1 }
 0x124   : > { %v2764_v21 = vpop.f32.mrf.mxu0 }
 0x125   : > { %2948 = vst [vmem:[#allocation4_spill] sm:$0xff] %v2764_v21  ;;  %v2766_v38 = vpop.f32.mrf.mxu1 }
 0x126   : > { %2949 = vst [vmem:[#allocation5_spill] sm:$0xff] %v2766_v38  ;;  %v2244_v44 = vpop.f32.mrf.mxu0 }
 0x127   : > { %v2226_v23 = vpop.f32.mrf.mxu1 }
 0x128   : > { %v1244_v25 = vpop.f32.mrf.mxu0 }
 0x129   : > { %v1079_v26 = vpop.f32.mrf.mxu1 }
 0x12a   : > { %v2768_v45 = vpop.f32.mrf.mxu0 }
 0x12b   : > { %v2227_v27 = vpop.f32.mrf.mxu1 }
 0x12c   : > { %v2770_v55 = vpop.f32.mrf.mxu0 }
 0x12d   : > { %v1082_v57 = vpop.f32.mrf.mxu1 }
 0x12e   : > { %v2772_v28 = vpop.f32.mrf.mxu0 }
 0x12f   : > { %v2230_v31 = vpop.f32.mrf.mxu1 }
 0x130   : > { %v2774_v58 = vpop.f32.mrf.mxu0 }
 0x131   : > { %2950 = vst [vmem:[#allocation6_spill] sm:$0xff] %v2774_v58  ;;  %v2776_v30 = vpop.f32.mrf.mxu1 }
 0x132   : > { %v2778_v33 = vpop.f32.mrf.mxu0 }
 0x133   : > { %2951 = vst [vmem:[#allocation7_spill] sm:$0xff] %v2778_v33  ;;  %v2780_v35 = vpop.f32.mrf.mxu1 }
 0x134   : > { %2952 = vst [vmem:[#allocation8_spill] sm:$0xff] %v2780_v35  ;;  %v2782_v32 = vpop.f32.mrf.mxu0 }
 0x135   : > { %2953 = vst [vmem:[#allocation9_spill] sm:$0xff] %v2782_v32  ;;  %v2784_v37 = vpop.f32.mrf.mxu1  ;;  %v811_v32 = vadd.f32 %v749_v42, %v2702_v49  ;;  %v815_v42 = vadd.f32 %v765_v52, %v2710_v9  ;;  %v819_v9 = vadd.f32 %v2746_v4, %v2718_v24  ;;  %v1142_v4 = vadd.f32 %v1082_v57, %v977_v61 }
 0x136   : > { %2954 = vst [vmem:[#allocation10_spill] sm:$0xff] %v2784_v37  ;;  %v2786_v40 = vpop.f32.mrf.mxu0 }
 0x137   : > { %2955 = vst [vmem:[#allocation11_spill] sm:$0xff] %v2786_v40  ;;  %v2788_v19 = vpop.f32.mrf.mxu1  ;;  %v980_v47 = vadd.f32 %v2736_v51, %v815_v42 }
 0x138   : > { %2956 = vst [vmem:[#allocation12_spill] sm:$0xff] %v2788_v19  ;;  %v2790_v20 = vpop.f32.mrf.mxu0  ;;  %v978_v19 = vadd.f32 %v2208_v6, %v813_v2  ;;  %v816_v2 = vadd.f32 %v768_v60, %v2714_v18  ;;  %v820_v18 = vadd.f32 %v2754_v11, %v2722_v29 }
 0x139   : > { %2957 = vst [vmem:[#allocation13_spill] sm:$0xff] %v2790_v20  ;;  %v2792_v21 = vpop.f32.mrf.mxu1  ;;  %v814_v20 = vadd.f32 %v2191_v5, %v2704_v53  ;;  %v818_v53 = vadd.f32 %v2195_v39, %v2712_v14  ;;  %v822_v14 = vadd.f32 %v2750_v8, %v2720_v54  ;;  %v2840_v54 = vld [vmem:[%s2944_s2] ss:$0 sm:$0xff] }
 0x13a   : > { %2958 = vst [vmem:[#allocation14_spill] sm:$0xff] %v2792_v21  ;;  %v2794_v16 = vpop.f32.mrf.mxu0  ;;  %v1143_v13 = vadd.f32 %v2226_v23, %v978_v19  ;;  %v981_v24 = vadd.f32 %v2740_v59, %v816_v2  ;;  %v1145_v23 = vadd.f32 %v2776_v30, %v980_v47  ;;  %v2968_v2 = vld [vmem:[#allocation7_spill] sm:$0xff]  ;;  %v2970_v47 = vld [vmem:[#allocation2_spill] sm:$0xff] }
 0x13b   : > { %2959 = vst [vmem:[#allocation15_spill] sm:$0xff] %v2794_v16  ;;  %v2796_v38 = vpop.f32.mrf.mxu1  ;;  %v979_v49 = vadd.f32 %v2730_v46, %v814_v20  ;;  %v987_v59 = vadd.f32 %v2748_v7, %v822_v14 }
 0x13c   : > { %2960 = vst [vmem:[#allocation16_spill] sm:$0xff] %v2796_v38  ;;  %v2799_v33 = vpop.f32.mrf.mxu0  ;;  %v976_v38 = vadd.f32 %v914_v41, %v811_v32  ;;  %v821_v41 = vadd.f32 %v2198_v63, %v2716_v22  ;;  %v1308_v48 = vadd.f32 %v2244_v44, %v1143_v13  ;;  %v825_v22 = vadd.f32 %v2758_v15, %v2724_v3 }
 0x13d   : > { %2961 = vst [vmem:[#allocation17_spill] sm:$0xff] %v2799_v33  ;;  %v2801_v58 = vpop.f32.mrf.mxu1  ;;  %v985_v44 = vadd.f32 %v2752_v10, %v820_v18  ;;  %v2964_v10 = vld [vmem:[#allocation8_spill] sm:$0xff] }
 0x13e   : > { %2962 = vst [vmem:[#allocation18_spill] sm:$0xff] %v2801_v58  ;;  %v2804_v37 = vpop.f32.mrf.mxu0  ;;  %v817_v58 = vadd.f32 %v2194_v50, %v2708_v1  ;;  %v1144_v1 = vadd.f32 %v2227_v27, %v979_v49  ;;  %v986_v51 = vadd.f32 %v2742_v62, %v821_v41 }
 0x13f   : > { %2963 = vst [vmem:[#allocation19_spill] sm:$0xff] %v2804_v37  ;;  %v2806_v40 = vpop.f32.mrf.mxu1  ;;  %v1141_v37 = vadd.f32 %v1079_v26, %v976_v38  ;;  %v2850_v26 = vadd.f32 %v2756_v12, %v825_v22  ;;  %v2971_v22 = vld [vmem:[#allocation5_spill] sm:$0xff] }
 0x140   : > { %v2809_v21 = vpop.f32.mrf.mxu0  ;;  %v982_v46 = vadd.f32 %v2734_v34, %v817_v58  ;;  %v983_v34 = vadd.f32 %v2738_v56, %v818_v53  ;;  %v1309_v8 = vadd.f32 %v2768_v45, %v1144_v1  ;;  %v984_v56 = vadd.f32 %v2744_v0, %v819_v9 }
 0x141   : > { %v2811_v16 = vpop.f32.mrf.mxu1  ;;  %v1306_v39 = vadd.f32 %v1244_v25, %v1141_v37  ;;  %v1307_v0 = vadd.f32 %v2770_v55, %v1142_v4  ;;  %v2966_v55 = vld [vmem:[#allocation10_spill] sm:$0xff] }
 0x142   : > { %v2257_v33 = vpop.f32.mrf.mxu0  ;;  %v1147_v38 = vadd.f32 %v2230_v31, %v982_v46  ;;  %v2855_v31 = vadd.f32 %v2762_v17, %v2726_v36  ;;  %v1148_v58 = vadd.f32 %v2964_v10, %v983_v34  ;;  %v2965_v17 = vld [vmem:[#allocation6_spill] sm:$0xff]  ;;  %v1146_v37 = vadd.f32 %v2966_v55, %v981_v24  ;;  %v2977_v55 = vld [vmem:[#allocation15_spill] sm:$0xff] }
 0x143   : > { %v2239_v35 = vpop.f32.mrf.mxu1  ;;  %v1310_v32 = vadd.f32 %v2965_v17, %v1145_v23  ;;  %v2969_v41 = vld [vmem:[#allocation14_spill] sm:$0xff] }
 0x144   : > { %v2817_v6 = vpop.f32.mrf.mxu0  ;;  %v1312_v7 = vadd.f32 %v2772_v28, %v1147_v38  ;;  %v2967_v28 = vld [vmem:[#allocation12_spill] sm:$0xff]  ;;  %v1313_v61 = vadd.f32 %v2968_v2, %v1148_v58  ;;  %v2973_v38 = vld [vmem:[#allocation11_spill] sm:$0xff] }
 0x145   : > { %v2821_v5 = vpop.f32.mrf.mxu1  ;;  %v1151_v19 = vadd.f32 %v2967_v28, %v986_v51  ;;  %v2976_v58 = vld [vmem:[#allocation18_spill] sm:$0xff]  ;;  %v1155_v28 = vadd.f32 %v2806_v40, %v2850_v26 }
 0x146   : > { %v2280_v50 = vpop.f32.mrf.mxu0 }
 0x147   : > { %v2262_v52 = vpop.f32.mrf.mxu1 }
 0x148   : > { %v1473_v60 = vadd.f32 %v2262_v52, %v1308_v48  ;;  %v1574_v63 = vpop.f32.mrf.mxu0  ;;  %v1149_v48 = vadd.f32 %v2969_v41, %v984_v56 }
 0x149   : > { %v1409_v29 = vpop.f32.mrf.mxu1 }
 0x14a   : > { %v1638_v3 = vadd.f32 %v2280_v50, %v1473_v60  ;;  %v1471_v11 = vadd.f32 %v1409_v29, %v1306_v39  ;;  %v2281_v15 = vpop.f32.mrf.mxu0  ;;  %v824_v39 = vadd.f32 %v2971_v22, %v2970_v47  ;;  %v2972_v60 = vld [vmem:[#allocation9_spill] sm:$0xff]  ;;  %v1316_v29 = vadd.f32 %v2973_v38, %v1151_v19 }
 0x14b   : > { %v2263_v25 = vpop.f32.mrf.mxu1 }
 0x14c   : > { %v1660_v62 = vadd.f32 %v2840_v54, %v1638_v3  ;;  %v1636_v27 = vadd.f32 %v1574_v63, %v1471_v11  ;;  %v1474_v45 = vadd.f32 %v2263_v25, %v1309_v8  ;;  %v1577_v57 = vpop.f32.mrf.mxu0  ;;  %v1311_v63 = vadd.f32 %v2972_v60, %v1146_v37  ;;  %v2981_v60 = vld [vmem:[#allocation19_spill] sm:$0xff] }
 0x14d   : > { %v1412_v30 = vpop.f32.mrf.mxu1 }
 0x14e   : > { %vm1675_vm3 = vcmp.ge.f32.partialorder %v1660_v62, 0.0  ;;  %v1690_v12 = vmul.f32 0.1, %v1660_v62  ;;  %v1658_v33 = vadd.f32 %v2840_v54, %v1636_v27  ;;  %v1639_v35 = vadd.f32 %v2281_v15, %v1474_v45  ;;  %v2284_v36 = vpop.f32.mrf.mxu0  ;;  %v2974_v15 = vld [vmem:[#allocation16_spill] sm:$0xff]  ;;  %v2975_v27 = vld [vmem:[#allocation13_spill] sm:$0xff] }
 0x14f   : > { %v1472_v20 = vadd.f32 %v1412_v30, %v1307_v0  ;;  %v2266_v43 = vpop.f32.mrf.mxu1  ;;  %v1152_v56 = vadd.f32 %v2974_v15, %v987_v59  ;;  %v1314_v45 = vadd.f32 %v2975_v27, %v1149_v48  ;;  %v1150_v30 = vadd.f32 %v2976_v58, %v985_v44 }
 0x150   : > { %v1705_v13 = vsel %vm1675_vm3, %v1660_v62, %v1690_v12  ;;  %vm1673_vm4 = vcmp.ge.f32.partialorder %v1658_v33, 0.0  ;;  %v1688_v49 = vmul.f32 0.1, %v1658_v33  ;;  %v1661_v42 = vadd.f32 %v2840_v54, %v1639_v35  ;;  %v1590_v53 = vpop.f32.mrf.mxu0 }
 0x151   : > { %1721 = vst.msk [vmem:[%s2863_s19 + $0x10] sm:$0xff] %vm1718_vm2, %v1705_v13  ;;  %v1637_v1 = vadd.f32 %v1577_v57, %v1472_v20  ;;  %v1477_v50 = vadd.f32 %v2266_v43, %v1312_v7  ;;  %v1425_v46 = vpop.f32.mrf.mxu1  ;;  %v1317_v37 = vadd.f32 %v2977_v55, %v1152_v56 }
 0x152   : > { %v1703_v9 = vsel %vm1673_vm4, %v1658_v33, %v1688_v49  ;;  %vm1676_vm5 = vcmp.ge.f32.partialorder %v1661_v42, 0.0  ;;  %v1691_v14 = vmul.f32 0.1, %v1661_v42  ;;  %v1475_v18 = vadd.f32 %v1425_v46, %v1310_v32  ;;  %v2285_v52 = vpop.f32.mrf.mxu0 }
 0x153   : > { %1719 = vst.msk [vmem:[%s2863_s19] sm:$0xff] %vm1718_vm2, %v1703_v9  ;;  %v1659_v34 = vadd.f32 %v2840_v54, %v1637_v1  ;;  %v1642_v24 = vadd.f32 %v2284_v36, %v1477_v50  ;;  %v2267_v4 = vpop.f32.mrf.mxu1 }
 0x154   : > { %v1706_v51 = vsel %vm1676_vm5, %v1661_v42, %v1691_v14  ;;  %v1640_v8 = vadd.f32 %v1590_v53, %v1475_v18  ;;  %v1478_v3 = vadd.f32 %v2267_v4, %v1313_v61  ;;  %v1593_v11 = vpop.f32.mrf.mxu0  ;;  %v2978_v53 = vld [vmem:[#allocation3_spill] sm:$0xff]  ;;  %v2979_v61 = vld [vmem:[#allocation17_spill] sm:$0xff]  ;;  %v2980_v14 = vld [vmem:[#allocation4_spill] sm:$0xff] }
 0x155   : > { %1722 = vst.msk [vmem:[%s2863_s19 + $0x18] sm:$0xff] %vm1718_vm2, %v1706_v51  ;;  %vm1674_vm6 = vcmp.ge.f32.partialorder %v1659_v34, 0.0  ;;  %v1689_v23 = vmul.f32 0.1, %v1659_v34  ;;  %v1664_v25 = vadd.f32 %v2840_v54, %v1642_v24  ;;  %v1428_v62 = vpop.f32.mrf.mxu1  ;;  %v988_v2 = vadd.f32 %v2978_v53, %v2855_v31 }
 0x156   : > { %v1662_v57 = vadd.f32 %v2840_v54, %v1640_v8  ;;  %v1643_v0 = vadd.f32 %v2285_v52, %v1478_v3  ;;  %v1476_v7 = vadd.f32 %v1428_v62, %v1311_v63  ;;  %v2288_v10 = vpop.f32.mrf.mxu0  ;;  %v1315_v41 = vadd.f32 %v2979_v61, %v1150_v30 }
 0x157   : > { %v1704_v12 = vsel %vm1674_vm6, %v1659_v34, %v1689_v23  ;;  %vm1679_vm7 = vcmp.ge.f32.partialorder %v1664_v25, 0.0  ;;  %v1694_v59 = vmul.f32 0.1, %v1664_v25  ;;  %v2270_v33 = vpop.f32.mrf.mxu1  ;;  %v989_v18 = vadd.f32 %v2980_v14, %v824_v39 }
 0x158   : > { %1720 = vst.msk [vmem:[%s2863_s19 + $0x8] sm:$0xff] %vm1718_vm2, %v1704_v12  ;;  %vm1677_vm8 = vcmp.ge.f32.partialorder %v1662_v57, 0.0  ;;  %v1692_v35 = vmul.f32 0.1, %v1662_v57  ;;  %v1665_v36 = vadd.f32 %v2840_v54, %v1643_v0  ;;  %v1641_v17 = vadd.f32 %v1593_v11, %v1476_v7  ;;  %v1606_v32 = vpop.f32.mrf.mxu0 }
 0x159   : > { %v1709_v44 = vsel %vm1679_vm7, %v1664_v25, %v1694_v59  ;;  %v1481_v19 = vadd.f32 %v2270_v33, %v1316_v29  ;;  %v1441_v20 = vpop.f32.mrf.mxu1  ;;  %v1153_v52 = vadd.f32 %v2811_v16, %v988_v2  ;;  %v1320_v63 = vadd.f32 %v2981_v60, %v1155_v28 }
 0x15a   : > { %1725 = vst.msk [vmem:[%s2863_s19 + $0x30] sm:$0xff] %vm1718_vm2, %v1709_v44  ;;  %v1707_v43 = vsel %vm1677_vm8, %v1662_v57, %v1692_v35  ;;  %vm1680_vm9 = vcmp.ge.f32.partialorder %v1665_v36, 0.0  ;;  %v1695_v13 = vmul.f32 0.1, %v1665_v36  ;;  %v1663_v49 = vadd.f32 %v2840_v54, %v1641_v17  ;;  %v2289_v42 = vpop.f32.mrf.mxu0 }
 0x15b   : > { %1723 = vst.msk [vmem:[%s2863_s19 + $0x20] sm:$0xff] %vm1718_vm2, %v1707_v43  ;;  %v1646_v40 = vadd.f32 %v2288_v10, %v1481_v19  ;;  %v1479_v26 = vadd.f32 %v1441_v20, %v1314_v45  ;;  %v2271_v48 = vpop.f32.mrf.mxu1  ;;  %v1154_v29 = vadd.f32 %v2821_v5, %v989_v18  ;;  %v1318_v56 = vadd.f32 %v2809_v21, %v1153_v52 }
 0x15c   : > { %v1710_v1 = vsel %vm1680_vm9, %v1665_v36, %v1695_v13  ;;  %vm1678_vm10 = vcmp.ge.f32.partialorder %v1663_v49, 0.0  ;;  %v1693_v50 = vmul.f32 0.1, %v1663_v49  ;;  %v1482_v46 = vadd.f32 %v2271_v48, %v1317_v37  ;;  %v1609_v9 = vpop.f32.mrf.mxu0 }
 0x15d   : > { %1726 = vst.msk [vmem:[%s2863_s19 + $0x38] sm:$0xff] %vm1718_vm2, %v1710_v1  ;;  %v1668_v31 = vadd.f32 %v2840_v54, %v1646_v40  ;;  %v1644_v47 = vadd.f32 %v1606_v32, %v1479_v26  ;;  %v1444_v22 = vpop.f32.mrf.mxu1  ;;  %v1319_v0 = vadd.f32 %v2817_v6, %v1154_v29 }
 0x15e   : > { %v1708_v34 = vsel %vm1678_vm10, %v1663_v49, %v1693_v50  ;;  %v1647_v24 = vadd.f32 %v2289_v42, %v1482_v46  ;;  %v1480_v4 = vadd.f32 %v1444_v22, %v1315_v41  ;;  %v2292_v38 = vpop.f32.mrf.mxu0 }
 0x15f   : > { %1724 = vst.msk [vmem:[%s2863_s19 + $0x28] sm:$0xff] %vm1718_vm2, %v1708_v34  ;;  %vm1683_vm11 = vcmp.ge.f32.partialorder %v1668_v31, 0.0  ;;  %v1698_v39 = vmul.f32 0.1, %v1668_v31  ;;  %v1666_v16 = vadd.f32 %v2840_v54, %v1644_v47  ;;  %v2274_v51 = vpop.f32.mrf.mxu1 }
 0x160   : > { %v1669_v8 = vadd.f32 %v2840_v54, %v1647_v24  ;;  %v1645_v3 = vadd.f32 %v1609_v9, %v1480_v4  ;;  %v1485_v11 = vadd.f32 %v2274_v51, %v1320_v63  ;;  %v1622_v15 = vpop.f32.mrf.mxu0 }
 0x161   : > { %v1713_v23 = vsel %vm1683_vm11, %v1668_v31, %v1698_v39  ;;  %vm1681_vm12 = vcmp.ge.f32.partialorder %v1666_v16, 0.0  ;;  %v1696_v25 = vmul.f32 0.1, %v1666_v16  ;;  %v1457_v62 = vpop.f32.mrf.mxu1 }
 0x162   : > { %1729 = vst.msk [vmem:[%s2863_s19 + $0x50] sm:$0xff] %vm1718_vm2, %v1713_v23  ;;  %vm1684_vm13 = vcmp.ge.f32.partialorder %v1669_v8, 0.0  ;;  %v1699_v5 = vmul.f32 0.1, %v1669_v8  ;;  %v1667_v27 = vadd.f32 %v2840_v54, %v1645_v3  ;;  %v1650_v45 = vadd.f32 %v2292_v38, %v1485_v11  ;;  %v2293_v57 = vpop.f32.mrf.mxu0 }
 0x163   : > { %v1711_v7 = vsel %vm1681_vm12, %v1666_v16, %v1696_v25  ;;  %v1483_v10 = vadd.f32 %v1457_v62, %v1318_v56  ;;  %v2275_v58 = vpop.f32.mrf.mxu1 }
 0x164   : > { %1727 = vst.msk [vmem:[%s2863_s19 + $0x40] sm:$0xff] %vm1718_vm2, %v1711_v7  ;;  %v1714_v21 = vsel %vm1684_vm13, %v1669_v8, %v1699_v5  ;;  %vm1682_vm14 = vcmp.ge.f32.partialorder %v1667_v27, 0.0  ;;  %v1697_v30 = vmul.f32 0.1, %v1667_v27  ;;  %v1672_v12 = vadd.f32 %v2840_v54, %v1650_v45  ;;  %v1625_v32 = vpop.f32.mrf.mxu0 }
 0x165   : > { %1730 = vst.msk [vmem:[%s2863_s19 + $0x58] sm:$0xff] %vm1718_vm2, %v1714_v21  ;;  %v1648_v59 = vadd.f32 %v1622_v15, %v1483_v10  ;;  %v1460_v33 = vpop.f32.mrf.mxu1 }
 0x166   : > { %v1712_v35 = vsel %vm1682_vm14, %v1667_v27, %v1697_v30  ;;  %vm1687_vm15 = vcmp.ge.f32.partialorder %v1672_v12, 0.0  ;;  %v1702_v6 = vmul.f32 0.1, %v1672_v12  ;;  %v1484_v36 = vadd.f32 %v1460_v33, %v1319_v0 }
 0x167   : > { %1728 = vst.msk [vmem:[%s2863_s19 + $0x48] sm:$0xff] %vm1718_vm2, %v1712_v35  ;;  %v1670_v17 = vadd.f32 %v2840_v54, %v1648_v59 }
 0x168   : > { %v1717_v55 = vsel %vm1687_vm15, %v1672_v12, %v1702_v6  ;;  %v1649_v37 = vadd.f32 %v1625_v32, %v1484_v36 }
 0x169   : > { %1733 = vst.msk [vmem:[%s2863_s19 + $0x70] sm:$0xff] %vm1718_vm2, %v1717_v55  ;;  %vm1685_vm0 = vcmp.ge.f32.partialorder %v1670_v17, 0.0  ;;  %v1700_v28 = vmul.f32 0.1, %v1670_v17 }
 0x16a   : > { %v1671_v44 = vadd.f32 %v2840_v54, %v1649_v37 }
 0x16b   : > { %v1715_v19 = vsel %vm1685_vm0, %v1670_v17, %v1700_v28 }
 0x16c   : > { %1731 = vst.msk [vmem:[%s2863_s19 + $0x60] sm:$0xff] %vm1718_vm2, %v1715_v19  ;;  %vm1686_vm1 = vcmp.ge.f32.partialorder %v1671_v44, 0.0  ;;  %v1701_v20 = vmul.f32 0.1, %v1671_v44 }
 0x16e   : > { %v1716_v43 = vsel %vm1686_vm1, %v1671_v44, %v1701_v20 }
 0x16f   : > { %1732 = vst.msk [vmem:[%s2863_s19 + $0x68] sm:$0xff] %vm1718_vm2, %v1716_v43 }
 0x170 PF: > { %s13_s14 = sadd.s32 1, %s2354_s14   ;;  %s2982_s12 = smov %s2350_s13 }
 0x171   : > { %p10_p5 = scmp.ge.s32.totalorder %s13_s14, 4   ;;  %s2983_s13 = smov %s2985_s15 }
 0x173   :  { %12 = sbr.rel (!%p10_p5) target bundleno = 2 (0x2), region = 79 }

</bundles_post_ra>
